<compile_context>
chip_gen: v6e
topology: v6e:2x2x1
jax: 0.10.0
libtpu: 0.0.40
codegen_flags: <defaults>
</compile_context>

<pallas_src>
import math

import jax
import jax.numpy as jnp
from jax.experimental import pallas as pl
from jax.experimental.pallas import tpu as pltpu

# ---- synthetic "inner" transformer config (small, deterministic) -----------
B, S, H = 2, 8, 32          # batch, seq, hidden  -> out_dim_size = H
NH, HD = 2, 16              # heads, head_dim (NH * HD == H)
FFN = 64                    # intermediate size
L = 2                       # num encoder layers -> L + 1 hidden states
VOCAB = 100
EPS = 1e-12
INIT_RANGE = 0.02           # Backbone.initializer_range
BS = B * S


def _layernorm(x, g, b):
    mu = jnp.mean(x, axis=-1, keepdims=True)
    var = jnp.mean((x - mu) ** 2, axis=-1, keepdims=True)
    return (x - mu) * jax.lax.rsqrt(var + EPS) * g + b


# ---------------------------- fused Pallas kernel ----------------------------
def backbone_kernel(x_ref, embln_ref, wqkv_ref, bqkv_ref, wo_ref, vecs_ref,
                    w1_ref, b1_ref, w2_ref, o_ref):
    """Whole Backbone forward in a single kernel invocation.

    x_ref    : (B*S, H)       word+position embedding sum (batch flattened)
    embln_ref: (2, H)         rows: emb-LN gamma, beta
    wqkv_ref : (L, H, 3H)     fused QKV weights (Q columns pre-scaled by 1/sqrt(HD))
    bqkv_ref : (L, 1, 3H)
    wo_ref   : (L, H, H)
    vecs_ref : (L, 6, H)      rows: bo, ln1_g, ln1_b, b2, ln2_g, ln2_b
    w1_ref   : (L, H, FFN);   b1_ref: (L, 1, FFN);   w2_ref: (L, FFN, H)
    o_ref    : (B, L+1, S, H) stacked hidden_states written in place
    """
    # embeddings LayerNorm (hidden_states[0])
    h = _layernorm(x_ref[...], embln_ref[0:1, :], embln_ref[1:2, :])      # (BS, H)
    o_ref[:, 0:1, :, :] = h.reshape(B, 1, S, H)

    for li in range(L):               # static unroll: all weights stay VMEM-resident
        # fused QKV projection: one (BS,H)x(H,3H) MXU push instead of three
        qkv = jnp.dot(h, wqkv_ref[li],
                      preferred_element_type=jnp.float32) + bqkv_ref[li]  # (BS, 3H)
        q = qkv[:, 0 * H:1 * H].reshape(B, S, H)
        k = qkv[:, 1 * H:2 * H].reshape(B, S, H)
        v = qkv[:, 2 * H:3 * H].reshape(B, S, H)

        wo = wo_ref[li]               # (H, H)
        vecs = vecs_ref[li]           # (6, H)

        # multi-head attention, batched over B; per-head slices of Wo are
        # accumulated directly so no lane concatenate of head contexts is needed.
        attn = jnp.zeros((BS, H), jnp.float32)
        for n in range(NH):
            lo = n * HD
            qh = q[:, :, lo:lo + HD]
            kh = k[:, :, lo:lo + HD]
            vh = v[:, :, lo:lo + HD]
            # 1/sqrt(HD) already folded into the Q columns of wqkv
            s = jnp.einsum('bqd,bkd->bqk', qh, kh,
                           preferred_element_type=jnp.float32)            # (B, S, S)
            # TODO(synk): attention_mask from x.tensor_dict assumed all-ones (no padding)
            p = jnp.exp(s - jnp.max(s, axis=-1, keepdims=True))
            p = p * pl.reciprocal(jnp.sum(p, axis=-1, keepdims=True), approx=True)
            ctx = jnp.einsum('bqk,bkd->bqd', p, vh,
                             preferred_element_type=jnp.float32)          # (B, S, HD)
            attn = attn + jnp.dot(ctx.reshape(BS, HD), wo[lo:lo + HD, :],
                                  preferred_element_type=jnp.float32)

        h1 = _layernorm(h + attn + vecs[0:1], vecs[1:2], vecs[2:3])       # post-attn LN

        f = jnp.dot(h1, w1_ref[li], preferred_element_type=jnp.float32) + b1_ref[li]
        # TODO(synk): HF BERT default act is exact erf-GELU; tanh approximation used here
        f = jax.nn.gelu(f, approximate=True)
        f = jnp.dot(f, w2_ref[li], preferred_element_type=jnp.float32) + vecs[3:4]
        h = _layernorm(h1 + f, vecs[4:5], vecs[5:6])                      # post-FFN LN

        o_ref[:, li + 1:li + 2, :, :] = h.reshape(B, 1, S, H)


# ---------------------------- wrapper -----------------------------------------
@jax.jit
def backbone_forward(token_ids, params):
    # embedding gather + position add (XLA glue; all hot-path math is in the kernel)
    emb = params["word_emb"][token_ids] + params["pos_emb"][None, :, :]   # (B, S, H)
    x = emb.reshape(BS, H)
    vmem_spec = pl.BlockSpec(memory_space=pltpu.MemorySpace.VMEM)
    return pl.pallas_call(
        backbone_kernel,
        out_shape=jax.ShapeDtypeStruct((B, L + 1, S, H), jnp.float32),
        in_specs=[vmem_spec] * 9,
        out_specs=vmem_spec,
    )(x, params["emb_ln"], params["wqkv"], params["bqkv"], params["wo"],
      params["vecs"], params["w1"], params["b1"], params["w2"])


# ---------------------------- parameter init ----------------------------------
def init_params(key):
    keys = jax.random.split(key, 2 + L)
    scale = 1.0 / math.sqrt(HD)
    p = {
        "word_emb": INIT_RANGE * jax.random.normal(keys[0], (VOCAB, H), jnp.float32),
        "pos_emb": INIT_RANGE * jax.random.normal(keys[1], (S, H), jnp.float32),
        "emb_ln": jnp.stack([jnp.ones((H,), jnp.float32),
                             jnp.zeros((H,), jnp.float32)]),              # (2, H)
    }
    wqkv, bqkv, wo, vecs, w1, b1, w2 = [], [], [], [], [], [], []
    for li in range(L):
        k = jax.random.split(keys[2 + li], 6)
        wq = INIT_RANGE * jax.random.normal(k[0], (H, H), jnp.float32)
        wk = INIT_RANGE * jax.random.normal(k[1], (H, H), jnp.float32)
        wv = INIT_RANGE * jax.random.normal(k[2], (H, H), jnp.float32)
        # fold the 1/sqrt(head_dim) attention scale into the Q projection columns
        wqkv.append(jnp.concatenate([wq * scale, wk, wv], axis=1))        # (H, 3H)
        bqkv.append(jnp.zeros((1, 3 * H), jnp.float32))
        wo.append(INIT_RANGE * jax.random.normal(k[3], (H, H), jnp.float32))
        # packed small vectors, rows: bo, ln1_g, ln1_b, b2, ln2_g, ln2_b
        vecs.append(jnp.stack([jnp.zeros((H,)), jnp.ones((H,)), jnp.zeros((H,)),
                               jnp.zeros((H,)), jnp.ones((H,)), jnp.zeros((H,))
                               ]).astype(jnp.float32))                    # (6, H)
        w1.append(INIT_RANGE * jax.random.normal(k[4], (H, FFN), jnp.float32))
        b1.append(jnp.zeros((1, FFN), jnp.float32))
        w2.append(INIT_RANGE * jax.random.normal(k[5], (FFN, H), jnp.float32))
    p["wqkv"] = jnp.stack(wqkv)      # (L, H, 3H)
    p["bqkv"] = jnp.stack(bqkv)      # (L, 1, 3H)
    p["wo"] = jnp.stack(wo)          # (L, H, H)
    p["vecs"] = jnp.stack(vecs)      # (L, 6, H)
    p["w1"] = jnp.stack(w1)          # (L, H, FFN)
    p["b1"] = jnp.stack(b1)          # (L, 1, FFN)
    p["w2"] = jnp.stack(w2)          # (L, FFN, H)
    return p


# ---------------------------- Backbone.forward demo ---------------------------
if __name__ == "__main__":
    key = jax.random.PRNGKey(0)
    k_param, k_tok = jax.random.split(key)
    params = init_params(k_param)
    token_ids = jax.random.randint(k_tok, (B, S), 0, VOCAB)

    out = backbone_forward(token_ids, params)   # [B, L+1, S, H] == torch.stack(hidden_states, dim=1)
    out = jax.block_until_ready(out)

    assert out.shape == (B, L + 1, S, H), out.shape
    assert out.dtype == jnp.float32
    assert bool(jnp.all(jnp.isfinite(out)))
    print("KERNEL_OK")
</pallas_src>

<mosaic_0001>
module attributes {stable_mosaic.version = 11 : i64} {
  func.func @backbone_kernel(%arg0: memref<16x32xf32, #tpu.memory_space<vmem>>, %arg1: memref<2x32xf32, #tpu.memory_space<vmem>>, %arg2: memref<2x32x96xf32, #tpu.memory_space<vmem>>, %arg3: memref<2x1x96xf32, #tpu.memory_space<vmem>>, %arg4: memref<2x32x32xf32, #tpu.memory_space<vmem>>, %arg5: memref<2x6x32xf32, #tpu.memory_space<vmem>>, %arg6: memref<2x32x64xf32, #tpu.memory_space<vmem>>, %arg7: memref<2x1x64xf32, #tpu.memory_space<vmem>>, %arg8: memref<2x64x32xf32, #tpu.memory_space<vmem>>, %arg9: memref<2x3x8x32xf32, #tpu.memory_space<vmem>>) attributes {dimension_semantics = [], scalar_prefetch = 0 : i64, scratch_operands = 0 : i64, tpu.core_type = #tpu.core_type<tc>} {
    %c0 = arith.constant 0 : index
    %c0_0 = arith.constant 0 : index
    %0 = vector.load %arg0[%c0, %c0_0] : memref<16x32xf32, #tpu.memory_space<vmem>>, vector<16x32xf32>
    %c0_1 = arith.constant 0 : index
    %c0_2 = arith.constant 0 : index
    %1 = vector.load %arg1[%c0_1, %c0_2] : memref<2x32xf32, #tpu.memory_space<vmem>>, vector<1x32xf32>
    %c1 = arith.constant 1 : index
    %c0_3 = arith.constant 0 : index
    %2 = vector.load %arg1[%c1, %c0_3] : memref<2x32xf32, #tpu.memory_space<vmem>>, vector<1x32xf32>
    %cst = arith.constant dense<0.000000e+00> : vector<16xf32>
    %3 = vector.multi_reduction <add>, %0, %cst [1] : vector<16x32xf32> to vector<16xf32>
    %4 = vector.shape_cast %3 : vector<16xf32> to vector<16x1xf32>
    %cst_4 = arith.constant 3.200000e+01 : f32
    %5 = vector.broadcast %cst_4 : f32 to vector<16x1xf32>
    %6 = arith.divf %4, %5 : vector<16x1xf32>
    %7 = vector.broadcast %6 : vector<16x1xf32> to vector<16x32xf32>
    %8 = arith.subf %0, %7 : vector<16x32xf32>
    %9 = arith.mulf %8, %8 : vector<16x32xf32>
    %cst_5 = arith.constant dense<0.000000e+00> : vector<16xf32>
    %10 = vector.multi_reduction <add>, %9, %cst_5 [1] : vector<16x32xf32> to vector<16xf32>
    %11 = vector.shape_cast %10 : vector<16xf32> to vector<16x1xf32>
    %cst_6 = arith.constant 3.200000e+01 : f32
    %12 = vector.broadcast %cst_6 : f32 to vector<16x1xf32>
    %13 = arith.divf %11, %12 : vector<16x1xf32>
    %14 = vector.broadcast %6 : vector<16x1xf32> to vector<16x32xf32>
    %15 = arith.subf %0, %14 : vector<16x32xf32>
    %cst_7 = arith.constant 9.99999996E-13 : f32
    %16 = vector.broadcast %cst_7 : f32 to vector<16x1xf32>
    %17 = arith.addf %13, %16 : vector<16x1xf32>
    %18 = math.rsqrt %17 : vector<16x1xf32>
    %19 = vector.broadcast %18 : vector<16x1xf32> to vector<16x32xf32>
    %20 = arith.mulf %15, %19 : vector<16x32xf32>
    %21 = vector.broadcast %1 : vector<1x32xf32> to vector<16x32xf32>
    %22 = arith.mulf %20, %21 : vector<16x32xf32>
    %23 = vector.broadcast %2 : vector<1x32xf32> to vector<16x32xf32>
    %24 = arith.addf %22, %23 : vector<16x32xf32>
    %25 = vector.shape_cast %24 : vector<16x32xf32> to vector<2x1x8x32xf32>
    %c0_8 = arith.constant 0 : index
    %c0_9 = arith.constant 0 : index
    %c0_10 = arith.constant 0 : index
    %c0_11 = arith.constant 0 : index
    %26 = vector.load %arg9[%c0_8, %c0_9, %c0_10, %c0_11] : memref<2x3x8x32xf32, #tpu.memory_space<vmem>>, vector<2x1x8x32xf32>
    tpu.vector_store %arg9[%c0_8, %c0_9, %c0_10, %c0_11], %25 {strides = array<i32>} : memref<2x3x8x32xf32, #tpu.memory_space<vmem>>, vector<2x1x8x32xf32>,
    %c0_12 = arith.constant 0 : index
    %c0_13 = arith.constant 0 : index
    %c0_14 = arith.constant 0 : index
    %27 = vector.load %arg2[%c0_12, %c0_13, %c0_14] : memref<2x32x96xf32, #tpu.memory_space<vmem>>, vector<1x32x96xf32>
    %28 = vector.shape_cast %27 : vector<1x32x96xf32> to vector<32x96xf32>
    %cst_15 = arith.constant dense<0.000000e+00> : vector<16x96xf32>
    %29 = tpu.matmul %24, %28, %cst_15 {dimension_numbers = #tpu.dot_dimension_numbers<[1], [0], [0], [1], [0, 0, 1, 1], [], []>} : vector<16x32xf32>, vector<32x96xf32>, vector<16x96xf32> -> vector<16x96xf32>
    %c0_16 = arith.constant 0 : index
    %c0_17 = arith.constant 0 : index
    %c0_18 = arith.constant 0 : index
    %30 = vector.load %arg3[%c0_16, %c0_17, %c0_18] : memref<2x1x96xf32, #tpu.memory_space<vmem>>, vector<1x1x96xf32>
    %31 = vector.shape_cast %30 : vector<1x1x96xf32> to vector<1x96xf32>
    %32 = vector.broadcast %31 : vector<1x96xf32> to vector<16x96xf32>
    %33 = arith.addf %29, %32 : vector<16x96xf32>
    %34 = vector.extract_strided_slice %33 {offsets = [0, 0], sizes = [16, 32], strides = [1, 1]} : vector<16x96xf32> to vector<16x32xf32>
    %35 = vector.shape_cast %34 : vector<16x32xf32> to vector<2x8x32xf32>
    %36 = vector.extract_strided_slice %33 {offsets = [0, 32], sizes = [16, 32], strides = [1, 1]} : vector<16x96xf32> to vector<16x32xf32>
    %37 = vector.shape_cast %36 : vector<16x32xf32> to vector<2x8x32xf32>
    %38 = vector.extract_strided_slice %33 {offsets = [0, 64], sizes = [16, 32], strides = [1, 1]} : vector<16x96xf32> to vector<16x32xf32>
    %39 = vector.shape_cast %38 : vector<16x32xf32> to vector<2x8x32xf32>
    %c0_19 = arith.constant 0 : index
    %c0_20 = arith.constant 0 : index
    %c0_21 = arith.constant 0 : index
    %40 = vector.load %arg4[%c0_19, %c0_20, %c0_21] : memref<2x32x32xf32, #tpu.memory_space<vmem>>, vector<1x32x32xf32>
    %41 = vector.shape_cast %40 : vector<1x32x32xf32> to vector<32x32xf32>
    %c0_22 = arith.constant 0 : index
    %c0_23 = arith.constant 0 : index
    %c0_24 = arith.constant 0 : index
    %42 = vector.load %arg5[%c0_22, %c0_23, %c0_24] : memref<2x6x32xf32, #tpu.memory_space<vmem>>, vector<1x6x32xf32>
    %43 = vector.shape_cast %42 : vector<1x6x32xf32> to vector<6x32xf32>
    %cst_25 = arith.constant 0.000000e+00 : f32
    %44 = vector.broadcast %cst_25 : f32 to vector<16x32xf32>
    %45 = vector.extract_strided_slice %35 {offsets = [0, 0, 0], sizes = [2, 8, 16], strides = [1, 1, 1]} : vector<2x8x32xf32> to vector<2x8x16xf32>
    %46 = vector.extract_strided_slice %37 {offsets = [0, 0, 0], sizes = [2, 8, 16], strides = [1, 1, 1]} : vector<2x8x32xf32> to vector<2x8x16xf32>
    %47 = vector.extract_strided_slice %39 {offsets = [0, 0, 0], sizes = [2, 8, 16], strides = [1, 1, 1]} : vector<2x8x32xf32> to vector<2x8x16xf32>
    "tpu.trace_start"() <{level = 10 : i32, message = "bqd,bkd->bqk"}> : () -> ()
    %cst_26 = arith.constant dense<0.000000e+00> : vector<2x8x8xf32>
    %48 = tpu.matmul %45, %46, %cst_26 {dimension_numbers = #tpu.dot_dimension_numbers<[2], [2], [1], [1], [0, 0, 0, 1, 1, 1], [0], [0]>} : vector<2x8x16xf32>, vector<2x8x16xf32>, vector<2x8x8xf32> -> vector<2x8x8xf32>
    "tpu.trace_stop"() : () -> ()
    %cst_27 = arith.constant dense<0xFF800000> : vector<2x8xf32>
    %49 = vector.multi_reduction <maximumf>, %48, %cst_27 [2] : vector<2x8x8xf32> to vector<2x8xf32>
    %50 = vector.shape_cast %49 : vector<2x8xf32> to vector<2x8x1xf32>
    %51 = vector.broadcast %50 : vector<2x8x1xf32> to vector<2x8x8xf32>
    %52 = arith.subf %48, %51 : vector<2x8x8xf32>
    %53 = math.exp %52 : vector<2x8x8xf32>
    %cst_28 = arith.constant dense<0.000000e+00> : vector<2x8xf32>
    %54 = vector.multi_reduction <add>, %53, %cst_28 [2] : vector<2x8x8xf32> to vector<2x8xf32>
    %55 = vector.shape_cast %54 : vector<2x8xf32> to vector<2x8x1xf32>
    %56 = tpu.reciprocal %55 {approx = true} : vector<2x8x1xf32> -> vector<2x8x1xf32>
    %57 = vector.broadcast %56 : vector<2x8x1xf32> to vector<2x8x8xf32>
    %58 = arith.mulf %53, %57 : vector<2x8x8xf32>
    "tpu.trace_start"() <{level = 10 : i32, message = "bqk,bkd->bqd"}> : () -> ()
    %cst_29 = arith.constant dense<0.000000e+00> : vector<2x8x16xf32>
    %59 = tpu.matmul %58, %47, %cst_29 {dimension_numbers = #tpu.dot_dimension_numbers<[2], [1], [1], [2], [0, 0, 0, 1, 1, 2], [0], [0]>} : vector<2x8x8xf32>, vector<2x8x16xf32>, vector<2x8x16xf32> -> vector<2x8x16xf32>
    "tpu.trace_stop"() : () -> ()
    %60 = vector.shape_cast %59 : vector<2x8x16xf32> to vector<16x16xf32>
    %61 = vector.extract_strided_slice %41 {offsets = [0, 0], sizes = [16, 32], strides = [1, 1]} : vector<32x32xf32> to vector<16x32xf32>
    %cst_30 = arith.constant dense<0.000000e+00> : vector<16x32xf32>
    %62 = tpu.matmul %60, %61, %cst_30 {dimension_numbers = #tpu.dot_dimension_numbers<[1], [0], [0], [1], [0, 0, 1, 1], [], []>} : vector<16x16xf32>, vector<16x32xf32>, vector<16x32xf32> -> vector<16x32xf32>
    %63 = arith.addf %44, %62 : vector<16x32xf32>
    %64 = vector.extract_strided_slice %35 {offsets = [0, 0, 16], sizes = [2, 8, 16], strides = [1, 1, 1]} : vector<2x8x32xf32> to vector<2x8x16xf32>
    %65 = vector.extract_strided_slice %37 {offsets = [0, 0, 16], sizes = [2, 8, 16], strides = [1, 1, 1]} : vector<2x8x32xf32> to vector<2x8x16xf32>
    %66 = vector.extract_strided_slice %39 {offsets = [0, 0, 16], sizes = [2, 8, 16], strides = [1, 1, 1]} : vector<2x8x32xf32> to vector<2x8x16xf32>
    "tpu.trace_start"() <{level = 10 : i32, message = "bqd,bkd->bqk"}> : () -> ()
    %cst_31 = arith.constant dense<0.000000e+00> : vector<2x8x8xf32>
    %67 = tpu.matmul %64, %65, %cst_31 {dimension_numbers = #tpu.dot_dimension_numbers<[2], [2], [1], [1], [0, 0, 0, 1, 1, 1], [0], [0]>} : vector<2x8x16xf32>, vector<2x8x16xf32>, vector<2x8x8xf32> -> vector<2x8x8xf32>
    "tpu.trace_stop"() : () -> ()
    %cst_32 = arith.constant dense<0xFF800000> : vector<2x8xf32>
    %68 = vector.multi_reduction <maximumf>, %67, %cst_32 [2] : vector<2x8x8xf32> to vector<2x8xf32>
    %69 = vector.shape_cast %68 : vector<2x8xf32> to vector<2x8x1xf32>
    %70 = vector.broadcast %69 : vector<2x8x1xf32> to vector<2x8x8xf32>
    %71 = arith.subf %67, %70 : vector<2x8x8xf32>
    %72 = math.exp %71 : vector<2x8x8xf32>
    %cst_33 = arith.constant dense<0.000000e+00> : vector<2x8xf32>
    %73 = vector.multi_reduction <add>, %72, %cst_33 [2] : vector<2x8x8xf32> to vector<2x8xf32>
    %74 = vector.shape_cast %73 : vector<2x8xf32> to vector<2x8x1xf32>
    %75 = tpu.reciprocal %74 {approx = true} : vector<2x8x1xf32> -> vector<2x8x1xf32>
    %76 = vector.broadcast %75 : vector<2x8x1xf32> to vector<2x8x8xf32>
    %77 = arith.mulf %72, %76 : vector<2x8x8xf32>
    "tpu.trace_start"() <{level = 10 : i32, message = "bqk,bkd->bqd"}> : () -> ()
    %cst_34 = arith.constant dense<0.000000e+00> : vector<2x8x16xf32>
    %78 = tpu.matmul %77, %66, %cst_34 {dimension_numbers = #tpu.dot_dimension_numbers<[2], [1], [1], [2], [0, 0, 0, 1, 1, 2], [0], [0]>} : vector<2x8x8xf32>, vector<2x8x16xf32>, vector<2x8x16xf32> -> vector<2x8x16xf32>
    "tpu.trace_stop"() : () -> ()
    %79 = vector.shape_cast %78 : vector<2x8x16xf32> to vector<16x16xf32>
    %80 = vector.extract_strided_slice %41 {offsets = [16, 0], sizes = [16, 32], strides = [1, 1]} : vector<32x32xf32> to vector<16x32xf32>
    %cst_35 = arith.constant dense<0.000000e+00> : vector<16x32xf32>
    %81 = tpu.matmul %79, %80, %cst_35 {dimension_numbers = #tpu.dot_dimension_numbers<[1], [0], [0], [1], [0, 0, 1, 1], [], []>} : vector<16x16xf32>, vector<16x32xf32>, vector<16x32xf32> -> vector<16x32xf32>
    %82 = arith.addf %63, %81 : vector<16x32xf32>
    %83 = arith.addf %24, %82 : vector<16x32xf32>
    %84 = vector.extract_strided_slice %43 {offsets = [0, 0], sizes = [1, 32], strides = [1, 1]} : vector<6x32xf32> to vector<1x32xf32>
    %85 = vector.broadcast %84 : vector<1x32xf32> to vector<16x32xf32>
    %86 = arith.addf %83, %85 : vector<16x32xf32>
    %87 = vector.extract_strided_slice %43 {offsets = [1, 0], sizes = [1, 32], strides = [1, 1]} : vector<6x32xf32> to vector<1x32xf32>
    %88 = vector.extract_strided_slice %43 {offsets = [2, 0], sizes = [1, 32], strides = [1, 1]} : vector<6x32xf32> to vector<1x32xf32>
    %cst_36 = arith.constant dense<0.000000e+00> : vector<16xf32>
    %89 = vector.multi_reduction <add>, %86, %cst_36 [1] : vector<16x32xf32> to vector<16xf32>
    %90 = vector.shape_cast %89 : vector<16xf32> to vector<16x1xf32>
    %cst_37 = arith.constant 3.200000e+01 : f32
    %91 = vector.broadcast %cst_37 : f32 to vector<16x1xf32>
    %92 = arith.divf %90, %91 : vector<16x1xf32>
    %93 = vector.broadcast %92 : vector<16x1xf32> to vector<16x32xf32>
    %94 = arith.subf %86, %93 : vector<16x32xf32>
    %95 = arith.mulf %94, %94 : vector<16x32xf32>
    %cst_38 = arith.constant dense<0.000000e+00> : vector<16xf32>
    %96 = vector.multi_reduction <add>, %95, %cst_38 [1] : vector<16x32xf32> to vector<16xf32>
    %97 = vector.shape_cast %96 : vector<16xf32> to vector<16x1xf32>
    %cst_39 = arith.constant 3.200000e+01 : f32
    %98 = vector.broadcast %cst_39 : f32 to vector<16x1xf32>
    %99 = arith.divf %97, %98 : vector<16x1xf32>
    %100 = vector.broadcast %92 : vector<16x1xf32> to vector<16x32xf32>
    %101 = arith.subf %86, %100 : vector<16x32xf32>
    %cst_40 = arith.constant 9.99999996E-13 : f32
    %102 = vector.broadcast %cst_40 : f32 to vector<16x1xf32>
    %103 = arith.addf %99, %102 : vector<16x1xf32>
    %104 = math.rsqrt %103 : vector<16x1xf32>
    %105 = vector.broadcast %104 : vector<16x1xf32> to vector<16x32xf32>
    %106 = arith.mulf %101, %105 : vector<16x32xf32>
    %107 = vector.broadcast %87 : vector<1x32xf32> to vector<16x32xf32>
    %108 = arith.mulf %106, %107 : vector<16x32xf32>
    %109 = vector.broadcast %88 : vector<1x32xf32> to vector<16x32xf32>
    %110 = arith.addf %108, %109 : vector<16x32xf32>
    %c0_41 = arith.constant 0 : index
    %c0_42 = arith.constant 0 : index
    %c0_43 = arith.constant 0 : index
    %111 = vector.load %arg6[%c0_41, %c0_42, %c0_43] : memref<2x32x64xf32, #tpu.memory_space<vmem>>, vector<1x32x64xf32>
    %112 = vector.shape_cast %111 : vector<1x32x64xf32> to vector<32x64xf32>
    %cst_44 = arith.constant dense<0.000000e+00> : vector<16x64xf32>
    %113 = tpu.matmul %110, %112, %cst_44 {dimension_numbers = #tpu.dot_dimension_numbers<[1], [0], [0], [1], [0, 0, 1, 1], [], []>} : vector<16x32xf32>, vector<32x64xf32>, vector<16x64xf32> -> vector<16x64xf32>
    %c0_45 = arith.constant 0 : index
    %c0_46 = arith.constant 0 : index
    %c0_47 = arith.constant 0 : index
    %114 = vector.load %arg7[%c0_45, %c0_46, %c0_47] : memref<2x1x64xf32, #tpu.memory_space<vmem>>, vector<1x1x64xf32>
    %115 = vector.shape_cast %114 : vector<1x1x64xf32> to vector<1x64xf32>
    %116 = vector.broadcast %115 : vector<1x64xf32> to vector<16x64xf32>
    %117 = arith.addf %113, %116 : vector<16x64xf32>
    %118 = arith.mulf %117, %117 : vector<16x64xf32>
    %119 = arith.mulf %117, %118 : vector<16x64xf32>
    %cst_48 = arith.constant 4.471500e-02 : f32
    %120 = vector.broadcast %cst_48 : f32 to vector<16x64xf32>
    %121 = arith.mulf %120, %119 : vector<16x64xf32>
    %122 = arith.addf %117, %121 : vector<16x64xf32>
    %cst_49 = arith.constant 0.797884583 : f32
    %123 = vector.broadcast %cst_49 : f32 to vector<16x64xf32>
    %124 = arith.mulf %123, %122 : vector<16x64xf32>
    %125 = math.tanh %124 : vector<16x64xf32>
    %cst_50 = arith.constant 1.000000e+00 : f32
    %126 = vector.broadcast %cst_50 : f32 to vector<16x64xf32>
    %127 = arith.addf %126, %125 : vector<16x64xf32>
    %cst_51 = arith.constant 5.000000e-01 : f32
    %128 = vector.broadcast %cst_51 : f32 to vector<16x64xf32>
    %129 = arith.mulf %128, %127 : vector<16x64xf32>
    %130 = arith.mulf %117, %129 : vector<16x64xf32>
    %c0_52 = arith.constant 0 : index
    %c0_53 = arith.constant 0 : index
    %c0_54 = arith.constant 0 : index
    %131 = vector.load %arg8[%c0_52, %c0_53, %c0_54] : memref<2x64x32xf32, #tpu.memory_space<vmem>>, vector<1x64x32xf32>
    %132 = vector.shape_cast %131 : vector<1x64x32xf32> to vector<64x32xf32>
    %cst_55 = arith.constant dense<0.000000e+00> : vector<16x32xf32>
    %133 = tpu.matmul %130, %132, %cst_55 {dimension_numbers = #tpu.dot_dimension_numbers<[1], [0], [0], [1], [0, 0, 1, 1], [], []>} : vector<16x64xf32>, vector<64x32xf32>, vector<16x32xf32> -> vector<16x32xf32>
    %134 = vector.extract_strided_slice %43 {offsets = [3, 0], sizes = [1, 32], strides = [1, 1]} : vector<6x32xf32> to vector<1x32xf32>
    %135 = vector.broadcast %134 : vector<1x32xf32> to vector<16x32xf32>
    %136 = arith.addf %133, %135 : vector<16x32xf32>
    %137 = arith.addf %110, %136 : vector<16x32xf32>
    %138 = vector.extract_strided_slice %43 {offsets = [4, 0], sizes = [1, 32], strides = [1, 1]} : vector<6x32xf32> to vector<1x32xf32>
    %139 = vector.extract_strided_slice %43 {offsets = [5, 0], sizes = [1, 32], strides = [1, 1]} : vector<6x32xf32> to vector<1x32xf32>
    %cst_56 = arith.constant dense<0.000000e+00> : vector<16xf32>
    %140 = vector.multi_reduction <add>, %137, %cst_56 [1] : vector<16x32xf32> to vector<16xf32>
    %141 = vector.shape_cast %140 : vector<16xf32> to vector<16x1xf32>
    %cst_57 = arith.constant 3.200000e+01 : f32
    %142 = vector.broadcast %cst_57 : f32 to vector<16x1xf32>
    %143 = arith.divf %141, %142 : vector<16x1xf32>
    %144 = vector.broadcast %143 : vector<16x1xf32> to vector<16x32xf32>
    %145 = arith.subf %137, %144 : vector<16x32xf32>
    %146 = arith.mulf %145, %145 : vector<16x32xf32>
    %cst_58 = arith.constant dense<0.000000e+00> : vector<16xf32>
    %147 = vector.multi_reduction <add>, %146, %cst_58 [1] : vector<16x32xf32> to vector<16xf32>
    %148 = vector.shape_cast %147 : vector<16xf32> to vector<16x1xf32>
    %cst_59 = arith.constant 3.200000e+01 : f32
    %149 = vector.broadcast %cst_59 : f32 to vector<16x1xf32>
    %150 = arith.divf %148, %149 : vector<16x1xf32>
    %151 = vector.broadcast %143 : vector<16x1xf32> to vector<16x32xf32>
    %152 = arith.subf %137, %151 : vector<16x32xf32>
    %cst_60 = arith.constant 9.99999996E-13 : f32
    %153 = vector.broadcast %cst_60 : f32 to vector<16x1xf32>
    %154 = arith.addf %150, %153 : vector<16x1xf32>
    %155 = math.rsqrt %154 : vector<16x1xf32>
    %156 = vector.broadcast %155 : vector<16x1xf32> to vector<16x32xf32>
    %157 = arith.mulf %152, %156 : vector<16x32xf32>
    %158 = vector.broadcast %138 : vector<1x32xf32> to vector<16x32xf32>
    %159 = arith.mulf %157, %158 : vector<16x32xf32>
    %160 = vector.broadcast %139 : vector<1x32xf32> to vector<16x32xf32>
    %161 = arith.addf %159, %160 : vector<16x32xf32>
    %162 = vector.shape_cast %161 : vector<16x32xf32> to vector<2x1x8x32xf32>
    %c0_61 = arith.constant 0 : index
    %c1_62 = arith.constant 1 : index
    %c0_63 = arith.constant 0 : index
    %c0_64 = arith.constant 0 : index
    %163 = vector.load %arg9[%c0_61, %c1_62, %c0_63, %c0_64] : memref<2x3x8x32xf32, #tpu.memory_space<vmem>>, vector<2x1x8x32xf32>
    tpu.vector_store %arg9[%c0_61, %c1_62, %c0_63, %c0_64], %162 {strides = array<i32>} : memref<2x3x8x32xf32, #tpu.memory_space<vmem>>, vector<2x1x8x32xf32>,
    %c1_65 = arith.constant 1 : index
    %c0_66 = arith.constant 0 : index
    %c0_67 = arith.constant 0 : index
    %164 = vector.load %arg2[%c1_65, %c0_66, %c0_67] : memref<2x32x96xf32, #tpu.memory_space<vmem>>, vector<1x32x96xf32>
    %165 = vector.shape_cast %164 : vector<1x32x96xf32> to vector<32x96xf32>
    %cst_68 = arith.constant dense<0.000000e+00> : vector<16x96xf32>
    %166 = tpu.matmul %161, %165, %cst_68 {dimension_numbers = #tpu.dot_dimension_numbers<[1], [0], [0], [1], [0, 0, 1, 1], [], []>} : vector<16x32xf32>, vector<32x96xf32>, vector<16x96xf32> -> vector<16x96xf32>
    %c1_69 = arith.constant 1 : index
    %c0_70 = arith.constant 0 : index
    %c0_71 = arith.constant 0 : index
    %167 = vector.load %arg3[%c1_69, %c0_70, %c0_71] : memref<2x1x96xf32, #tpu.memory_space<vmem>>, vector<1x1x96xf32>
    %168 = vector.shape_cast %167 : vector<1x1x96xf32> to vector<1x96xf32>
    %169 = vector.broadcast %168 : vector<1x96xf32> to vector<16x96xf32>
    %170 = arith.addf %166, %169 : vector<16x96xf32>
    %171 = vector.extract_strided_slice %170 {offsets = [0, 0], sizes = [16, 32], strides = [1, 1]} : vector<16x96xf32> to vector<16x32xf32>
    %172 = vector.shape_cast %171 : vector<16x32xf32> to vector<2x8x32xf32>
    %173 = vector.extract_strided_slice %170 {offsets = [0, 32], sizes = [16, 32], strides = [1, 1]} : vector<16x96xf32> to vector<16x32xf32>
    %174 = vector.shape_cast %173 : vector<16x32xf32> to vector<2x8x32xf32>
    %175 = vector.extract_strided_slice %170 {offsets = [0, 64], sizes = [16, 32], strides = [1, 1]} : vector<16x96xf32> to vector<16x32xf32>
    %176 = vector.shape_cast %175 : vector<16x32xf32> to vector<2x8x32xf32>
    %c1_72 = arith.constant 1 : index
    %c0_73 = arith.constant 0 : index
    %c0_74 = arith.constant 0 : index
    %177 = vector.load %arg4[%c1_72, %c0_73, %c0_74] : memref<2x32x32xf32, #tpu.memory_space<vmem>>, vector<1x32x32xf32>
    %178 = vector.shape_cast %177 : vector<1x32x32xf32> to vector<32x32xf32>
    %c1_75 = arith.constant 1 : index
    %c0_76 = arith.constant 0 : index
    %c0_77 = arith.constant 0 : index
    %179 = vector.load %arg5[%c1_75, %c0_76, %c0_77] : memref<2x6x32xf32, #tpu.memory_space<vmem>>, vector<1x6x32xf32>
    %180 = vector.shape_cast %179 : vector<1x6x32xf32> to vector<6x32xf32>
    %cst_78 = arith.constant 0.000000e+00 : f32
    %181 = vector.broadcast %cst_78 : f32 to vector<16x32xf32>
    %182 = vector.extract_strided_slice %172 {offsets = [0, 0, 0], sizes = [2, 8, 16], strides = [1, 1, 1]} : vector<2x8x32xf32> to vector<2x8x16xf32>
    %183 = vector.extract_strided_slice %174 {offsets = [0, 0, 0], sizes = [2, 8, 16], strides = [1, 1, 1]} : vector<2x8x32xf32> to vector<2x8x16xf32>
    %184 = vector.extract_strided_slice %176 {offsets = [0, 0, 0], sizes = [2, 8, 16], strides = [1, 1, 1]} : vector<2x8x32xf32> to vector<2x8x16xf32>
    "tpu.trace_start"() <{level = 10 : i32, message = "bqd,bkd->bqk"}> : () -> ()
    %cst_79 = arith.constant dense<0.000000e+00> : vector<2x8x8xf32>
    %185 = tpu.matmul %182, %183, %cst_79 {dimension_numbers = #tpu.dot_dimension_numbers<[2], [2], [1], [1], [0, 0, 0, 1, 1, 1], [0], [0]>} : vector<2x8x16xf32>, vector<2x8x16xf32>, vector<2x8x8xf32> -> vector<2x8x8xf32>
    "tpu.trace_stop"() : () -> ()
    %cst_80 = arith.constant dense<0xFF800000> : vector<2x8xf32>
    %186 = vector.multi_reduction <maximumf>, %185, %cst_80 [2] : vector<2x8x8xf32> to vector<2x8xf32>
    %187 = vector.shape_cast %186 : vector<2x8xf32> to vector<2x8x1xf32>
    %188 = vector.broadcast %187 : vector<2x8x1xf32> to vector<2x8x8xf32>
    %189 = arith.subf %185, %188 : vector<2x8x8xf32>
    %190 = math.exp %189 : vector<2x8x8xf32>
    %cst_81 = arith.constant dense<0.000000e+00> : vector<2x8xf32>
    %191 = vector.multi_reduction <add>, %190, %cst_81 [2] : vector<2x8x8xf32> to vector<2x8xf32>
    %192 = vector.shape_cast %191 : vector<2x8xf32> to vector<2x8x1xf32>
    %193 = tpu.reciprocal %192 {approx = true} : vector<2x8x1xf32> -> vector<2x8x1xf32>
    %194 = vector.broadcast %193 : vector<2x8x1xf32> to vector<2x8x8xf32>
    %195 = arith.mulf %190, %194 : vector<2x8x8xf32>
    "tpu.trace_start"() <{level = 10 : i32, message = "bqk,bkd->bqd"}> : () -> ()
    %cst_82 = arith.constant dense<0.000000e+00> : vector<2x8x16xf32>
    %196 = tpu.matmul %195, %184, %cst_82 {dimension_numbers = #tpu.dot_dimension_numbers<[2], [1], [1], [2], [0, 0, 0, 1, 1, 2], [0], [0]>} : vector<2x8x8xf32>, vector<2x8x16xf32>, vector<2x8x16xf32> -> vector<2x8x16xf32>
    "tpu.trace_stop"() : () -> ()
    %197 = vector.shape_cast %196 : vector<2x8x16xf32> to vector<16x16xf32>
    %198 = vector.extract_strided_slice %178 {offsets = [0, 0], sizes = [16, 32], strides = [1, 1]} : vector<32x32xf32> to vector<16x32xf32>
    %cst_83 = arith.constant dense<0.000000e+00> : vector<16x32xf32>
    %199 = tpu.matmul %197, %198, %cst_83 {dimension_numbers = #tpu.dot_dimension_numbers<[1], [0], [0], [1], [0, 0, 1, 1], [], []>} : vector<16x16xf32>, vector<16x32xf32>, vector<16x32xf32> -> vector<16x32xf32>
    %200 = arith.addf %181, %199 : vector<16x32xf32>
    %201 = vector.extract_strided_slice %172 {offsets = [0, 0, 16], sizes = [2, 8, 16], strides = [1, 1, 1]} : vector<2x8x32xf32> to vector<2x8x16xf32>
    %202 = vector.extract_strided_slice %174 {offsets = [0, 0, 16], sizes = [2, 8, 16], strides = [1, 1, 1]} : vector<2x8x32xf32> to vector<2x8x16xf32>
    %203 = vector.extract_strided_slice %176 {offsets = [0, 0, 16], sizes = [2, 8, 16], strides = [1, 1, 1]} : vector<2x8x32xf32> to vector<2x8x16xf32>
    "tpu.trace_start"() <{level = 10 : i32, message = "bqd,bkd->bqk"}> : () -> ()
    %cst_84 = arith.constant dense<0.000000e+00> : vector<2x8x8xf32>
    %204 = tpu.matmul %201, %202, %cst_84 {dimension_numbers = #tpu.dot_dimension_numbers<[2], [2], [1], [1], [0, 0, 0, 1, 1, 1], [0], [0]>} : vector<2x8x16xf32>, vector<2x8x16xf32>, vector<2x8x8xf32> -> vector<2x8x8xf32>
    "tpu.trace_stop"() : () -> ()
    %cst_85 = arith.constant dense<0xFF800000> : vector<2x8xf32>
    %205 = vector.multi_reduction <maximumf>, %204, %cst_85 [2] : vector<2x8x8xf32> to vector<2x8xf32>
    %206 = vector.shape_cast %205 : vector<2x8xf32> to vector<2x8x1xf32>
    %207 = vector.broadcast %206 : vector<2x8x1xf32> to vector<2x8x8xf32>
    %208 = arith.subf %204, %207 : vector<2x8x8xf32>
    %209 = math.exp %208 : vector<2x8x8xf32>
    %cst_86 = arith.constant dense<0.000000e+00> : vector<2x8xf32>
    %210 = vector.multi_reduction <add>, %209, %cst_86 [2] : vector<2x8x8xf32> to vector<2x8xf32>
    %211 = vector.shape_cast %210 : vector<2x8xf32> to vector<2x8x1xf32>
    %212 = tpu.reciprocal %211 {approx = true} : vector<2x8x1xf32> -> vector<2x8x1xf32>
    %213 = vector.broadcast %212 : vector<2x8x1xf32> to vector<2x8x8xf32>
    %214 = arith.mulf %209, %213 : vector<2x8x8xf32>
    "tpu.trace_start"() <{level = 10 : i32, message = "bqk,bkd->bqd"}> : () -> ()
    %cst_87 = arith.constant dense<0.000000e+00> : vector<2x8x16xf32>
    %215 = tpu.matmul %214, %203, %cst_87 {dimension_numbers = #tpu.dot_dimension_numbers<[2], [1], [1], [2], [0, 0, 0, 1, 1, 2], [0], [0]>} : vector<2x8x8xf32>, vector<2x8x16xf32>, vector<2x8x16xf32> -> vector<2x8x16xf32>
    "tpu.trace_stop"() : () -> ()
    %216 = vector.shape_cast %215 : vector<2x8x16xf32> to vector<16x16xf32>
    %217 = vector.extract_strided_slice %178 {offsets = [16, 0], sizes = [16, 32], strides = [1, 1]} : vector<32x32xf32> to vector<16x32xf32>
    %cst_88 = arith.constant dense<0.000000e+00> : vector<16x32xf32>
    %218 = tpu.matmul %216, %217, %cst_88 {dimension_numbers = #tpu.dot_dimension_numbers<[1], [0], [0], [1], [0, 0, 1, 1], [], []>} : vector<16x16xf32>, vector<16x32xf32>, vector<16x32xf32> -> vector<16x32xf32>
    %219 = arith.addf %200, %218 : vector<16x32xf32>
    %220 = arith.addf %161, %219 : vector<16x32xf32>
    %221 = vector.extract_strided_slice %180 {offsets = [0, 0], sizes = [1, 32], strides = [1, 1]} : vector<6x32xf32> to vector<1x32xf32>
    %222 = vector.broadcast %221 : vector<1x32xf32> to vector<16x32xf32>
    %223 = arith.addf %220, %222 : vector<16x32xf32>
    %224 = vector.extract_strided_slice %180 {offsets = [1, 0], sizes = [1, 32], strides = [1, 1]} : vector<6x32xf32> to vector<1x32xf32>
    %225 = vector.extract_strided_slice %180 {offsets = [2, 0], sizes = [1, 32], strides = [1, 1]} : vector<6x32xf32> to vector<1x32xf32>
    %cst_89 = arith.constant dense<0.000000e+00> : vector<16xf32>
    %226 = vector.multi_reduction <add>, %223, %cst_89 [1] : vector<16x32xf32> to vector<16xf32>
    %227 = vector.shape_cast %226 : vector<16xf32> to vector<16x1xf32>
    %cst_90 = arith.constant 3.200000e+01 : f32
    %228 = vector.broadcast %cst_90 : f32 to vector<16x1xf32>
    %229 = arith.divf %227, %228 : vector<16x1xf32>
    %230 = vector.broadcast %229 : vector<16x1xf32> to vector<16x32xf32>
    %231 = arith.subf %223, %230 : vector<16x32xf32>
    %232 = arith.mulf %231, %231 : vector<16x32xf32>
    %cst_91 = arith.constant dense<0.000000e+00> : vector<16xf32>
    %233 = vector.multi_reduction <add>, %232, %cst_91 [1] : vector<16x32xf32> to vector<16xf32>
    %234 = vector.shape_cast %233 : vector<16xf32> to vector<16x1xf32>
    %cst_92 = arith.constant 3.200000e+01 : f32
    %235 = vector.broadcast %cst_92 : f32 to vector<16x1xf32>
    %236 = arith.divf %234, %235 : vector<16x1xf32>
    %237 = vector.broadcast %229 : vector<16x1xf32> to vector<16x32xf32>
    %238 = arith.subf %223, %237 : vector<16x32xf32>
    %cst_93 = arith.constant 9.99999996E-13 : f32
    %239 = vector.broadcast %cst_93 : f32 to vector<16x1xf32>
    %240 = arith.addf %236, %239 : vector<16x1xf32>
    %241 = math.rsqrt %240 : vector<16x1xf32>
    %242 = vector.broadcast %241 : vector<16x1xf32> to vector<16x32xf32>
    %243 = arith.mulf %238, %242 : vector<16x32xf32>
    %244 = vector.broadcast %224 : vector<1x32xf32> to vector<16x32xf32>
    %245 = arith.mulf %243, %244 : vector<16x32xf32>
    %246 = vector.broadcast %225 : vector<1x32xf32> to vector<16x32xf32>
    %247 = arith.addf %245, %246 : vector<16x32xf32>
    %c1_94 = arith.constant 1 : index
    %c0_95 = arith.constant 0 : index
    %c0_96 = arith.constant 0 : index
    %248 = vector.load %arg6[%c1_94, %c0_95, %c0_96] : memref<2x32x64xf32, #tpu.memory_space<vmem>>, vector<1x32x64xf32>
    %249 = vector.shape_cast %248 : vector<1x32x64xf32> to vector<32x64xf32>
    %cst_97 = arith.constant dense<0.000000e+00> : vector<16x64xf32>
    %250 = tpu.matmul %247, %249, %cst_97 {dimension_numbers = #tpu.dot_dimension_numbers<[1], [0], [0], [1], [0, 0, 1, 1], [], []>} : vector<16x32xf32>, vector<32x64xf32>, vector<16x64xf32> -> vector<16x64xf32>
    %c1_98 = arith.constant 1 : index
    %c0_99 = arith.constant 0 : index
    %c0_100 = arith.constant 0 : index
    %251 = vector.load %arg7[%c1_98, %c0_99, %c0_100] : memref<2x1x64xf32, #tpu.memory_space<vmem>>, vector<1x1x64xf32>
    %252 = vector.shape_cast %251 : vector<1x1x64xf32> to vector<1x64xf32>
    %253 = vector.broadcast %252 : vector<1x64xf32> to vector<16x64xf32>
    %254 = arith.addf %250, %253 : vector<16x64xf32>
    %255 = arith.mulf %254, %254 : vector<16x64xf32>
    %256 = arith.mulf %254, %255 : vector<16x64xf32>
    %cst_101 = arith.constant 4.471500e-02 : f32
    %257 = vector.broadcast %cst_101 : f32 to vector<16x64xf32>
    %258 = arith.mulf %257, %256 : vector<16x64xf32>
    %259 = arith.addf %254, %258 : vector<16x64xf32>
    %cst_102 = arith.constant 0.797884583 : f32
    %260 = vector.broadcast %cst_102 : f32 to vector<16x64xf32>
    %261 = arith.mulf %260, %259 : vector<16x64xf32>
    %262 = math.tanh %261 : vector<16x64xf32>
    %cst_103 = arith.constant 1.000000e+00 : f32
    %263 = vector.broadcast %cst_103 : f32 to vector<16x64xf32>
    %264 = arith.addf %263, %262 : vector<16x64xf32>
    %cst_104 = arith.constant 5.000000e-01 : f32
    %265 = vector.broadcast %cst_104 : f32 to vector<16x64xf32>
    %266 = arith.mulf %265, %264 : vector<16x64xf32>
    %267 = arith.mulf %254, %266 : vector<16x64xf32>
    %c1_105 = arith.constant 1 : index
    %c0_106 = arith.constant 0 : index
    %c0_107 = arith.constant 0 : index
    %268 = vector.load %arg8[%c1_105, %c0_106, %c0_107] : memref<2x64x32xf32, #tpu.memory_space<vmem>>, vector<1x64x32xf32>
    %269 = vector.shape_cast %268 : vector<1x64x32xf32> to vector<64x32xf32>
    %cst_108 = arith.constant dense<0.000000e+00> : vector<16x32xf32>
    %270 = tpu.matmul %267, %269, %cst_108 {dimension_numbers = #tpu.dot_dimension_numbers<[1], [0], [0], [1], [0, 0, 1, 1], [], []>} : vector<16x64xf32>, vector<64x32xf32>, vector<16x32xf32> -> vector<16x32xf32>
    %271 = vector.extract_strided_slice %180 {offsets = [3, 0], sizes = [1, 32], strides = [1, 1]} : vector<6x32xf32> to vector<1x32xf32>
    %272 = vector.broadcast %271 : vector<1x32xf32> to vector<16x32xf32>
    %273 = arith.addf %270, %272 : vector<16x32xf32>
    %274 = arith.addf %247, %273 : vector<16x32xf32>
    %275 = vector.extract_strided_slice %180 {offsets = [4, 0], sizes = [1, 32], strides = [1, 1]} : vector<6x32xf32> to vector<1x32xf32>
    %276 = vector.extract_strided_slice %180 {offsets = [5, 0], sizes = [1, 32], strides = [1, 1]} : vector<6x32xf32> to vector<1x32xf32>
    %cst_109 = arith.constant dense<0.000000e+00> : vector<16xf32>
    %277 = vector.multi_reduction <add>, %274, %cst_109 [1] : vector<16x32xf32> to vector<16xf32>
    %278 = vector.shape_cast %277 : vector<16xf32> to vector<16x1xf32>
    %cst_110 = arith.constant 3.200000e+01 : f32
    %279 = vector.broadcast %cst_110 : f32 to vector<16x1xf32>
    %280 = arith.divf %278, %279 : vector<16x1xf32>
    %281 = vector.broadcast %280 : vector<16x1xf32> to vector<16x32xf32>
    %282 = arith.subf %274, %281 : vector<16x32xf32>
    %283 = arith.mulf %282, %282 : vector<16x32xf32>
    %cst_111 = arith.constant dense<0.000000e+00> : vector<16xf32>
    %284 = vector.multi_reduction <add>, %283, %cst_111 [1] : vector<16x32xf32> to vector<16xf32>
    %285 = vector.shape_cast %284 : vector<16xf32> to vector<16x1xf32>
    %cst_112 = arith.constant 3.200000e+01 : f32
    %286 = vector.broadcast %cst_112 : f32 to vector<16x1xf32>
    %287 = arith.divf %285, %286 : vector<16x1xf32>
    %288 = vector.broadcast %280 : vector<16x1xf32> to vector<16x32xf32>
    %289 = arith.subf %274, %288 : vector<16x32xf32>
    %cst_113 = arith.constant 9.99999996E-13 : f32
    %290 = vector.broadcast %cst_113 : f32 to vector<16x1xf32>
    %291 = arith.addf %287, %290 : vector<16x1xf32>
    %292 = math.rsqrt %291 : vector<16x1xf32>
    %293 = vector.broadcast %292 : vector<16x1xf32> to vector<16x32xf32>
    %294 = arith.mulf %289, %293 : vector<16x32xf32>
    %295 = vector.broadcast %275 : vector<1x32xf32> to vector<16x32xf32>
    %296 = arith.mulf %294, %295 : vector<16x32xf32>
    %297 = vector.broadcast %276 : vector<1x32xf32> to vector<16x32xf32>
    %298 = arith.addf %296, %297 : vector<16x32xf32>
    %299 = vector.shape_cast %298 : vector<16x32xf32> to vector<2x1x8x32xf32>
    %c0_114 = arith.constant 0 : index
    %c2 = arith.constant 2 : index
    %c0_115 = arith.constant 0 : index
    %c0_116 = arith.constant 0 : index
    %300 = vector.load %arg9[%c0_114, %c2, %c0_115, %c0_116] : memref<2x3x8x32xf32, #tpu.memory_space<vmem>>, vector<2x1x8x32xf32>
    tpu.vector_store %arg9[%c0_114, %c2, %c0_115, %c0_116], %299 {strides = array<i32>} : memref<2x3x8x32xf32, #tpu.memory_space<vmem>>, vector<2x1x8x32xf32>,
    return
  }
}

</mosaic_0001>

<bundles_post_ra>
// kernel: backbone_forward.1
= control target key start
LH: loop header
LB: loop body
LE: loop exit
PB: predicated region body
PF: predicated region fallthrough
CT: control target
= control target key end

     0   :  { %vm37_vm0 = vcmask 261120   ;;  %s3445_s0 = inlined_call_operand.vmem [shape: f32[16,32], index: 0, kind: input, shape index: {}]   ;;  %s3446_s1 = inlined_call_operand.vmem [shape: f32[2,32], index: 1, kind: input, shape index: {}]   ;;  %s3447_s2 = inlined_call_operand.vmem [shape: f32[2,32,96], index: 2, kind: input, shape index: {}]   ;;  %s3448_s3 = inlined_call_operand.vmem [shape: f32[2,1,96], index: 3, kind: input, shape index: {}]   ;;  %s3449_s4 = inlined_call_operand.vmem [shape: f32[2,32,32], index: 4, kind: input, shape index: {}]   ;;  %s3450_s5 = inlined_call_operand.vmem [shape: f32[2,6,32], index: 5, kind: input, shape index: {}]   ;;  %s3451_s6 = inlined_call_operand.vmem [shape: f32[2,32,64], index: 6, kind: input, shape index: {}]   ;;  %s3452_s7 = inlined_call_operand.vmem [shape: f32[2,1,64], index: 7, kind: input, shape index: {}]   ;;  %s3453_s8 = inlined_call_operand.vmem [shape: f32[2,64,32], index: 8, kind: input, shape index: {}]   ;;  %s3454_s9 = inlined_call_operand.hbm [shape: f32[2,3,8,32], index: 9, kind: output, shape index: {}]  }
   0x1   :  { %v33_v0 = vld [vmem:[%s3445_s0] sm:$0xff]  ;;  %v34_v1 = vld [vmem:[%s3445_s0 + $0x8] sm:$0xff] }
   0x2   :  { %14 = vsyncpa [#allocation3], 0  ;;  %v38_v2 = vsel %vm37_vm0, %v33_v0, 0.0  ;;  %v41_v3 = vsel %vm37_vm0, %v34_v1, 0.0  ;;  %v82_v14 = vld [vmem:[%s3447_s2 + $0x18] sm:$0xff]  ;;  %v81_v15 = vld [vmem:[%s3447_s2 + $0x10] sm:$0xff] }
   0x3   :  { %39 = vadd.xlane.f32.xlu0 %v38_v2  ;;  %2688 = vmatprep.subr.mxu0 %v82_v14  ;;  %v80_v16 = vld [vmem:[%s3447_s2 + $0x8] sm:$0xff]  ;;  %v79_v17 = vld [vmem:[%s3447_s2] sm:$0xff]  ;;  %v2970_v34 = vmov 0.0   ;;  %vm2971_vm1 = vmmov 0   ;;  %s2972_s25 = smov 96   ;;  %vm179_vm2 = vcmask 130048  }
   0x4   :  { %2689 = vmatpush3.msra.mxu0 %v82_v14  ;;  %v2523_v25 = vld [vmem:[%s3446_s1] ss:$0 sm:$0xff]  ;;  %v2524_v27 = vld [vmem:[%s3446_s1 + $0x1] ss:$0 sm:$0xff]  ;;  %2704 = vmatprep.subr.mxu1 %v2970_v34  ;;  %vm331_vm3 = vcmask 64512   ;;  %s2973_s26 = smov 64  }
   0x5   :  { %2690 = vmatprep.subr.mxu0 %v81_v15  ;;  %2706 = vmatprep.mubr.msk.f32.mxu1 %vm2971_vm1, %v2970_v34  ;;  %v2525_v35 = vld [vmem:[%s3448_s3] ss:$0 sm:$0xff]  ;;  %s2974_s27 = smov 80   ;;  %s2975_s28 = smov 112   ;;  %vm1166_vm4 = vcmask 523264  }
   0x6   :  { %2691 = vmatpush3.msra.mxu0 %v81_v15  ;;  %s2976_s29 = smov 48  }
   0x7   :  { %42 = vadd.xlane.f32.xlu0 %v41_v3  ;;  %2692 = vmatprep.subr.mxu0 %v80_v16 }
   0x8   :  { %2693 = vmatpush3.msra.mxu0 %v80_v16 }
   0x9   :  { %2694 = vmatprep.subr.mxu0 %v79_v17 }
   0xa   :  { %2695 = vmatpush3.msra.mxu0 %v79_v17 }
   0xb   :  { %2699 = vmatprep.subr.mxu0 %v2970_v34 }
  0x8c   :  { %v40_v4 = vpop.xlane.xlu0 %39 }
  0x8d   :  { %v45_v5 = vmul.f32 0.03125, %v40_v4 }
  0x8f   :  { %v47_v6 = vsub.f32 %v33_v0, %v45_v5 }
  0x90   :  { %v43_v7 = vpop.xlane.xlu0 %42 }
  0x91   :  { %v46_v8 = vmul.f32 0.03125, %v43_v7  ;;  %v49_v9 = vmul.f32 %v47_v6, %v47_v6 }
  0x93   :  { %v48_v10 = vsub.f32 %v34_v1, %v46_v8  ;;  %v51_v11 = vsel %vm37_vm0, %v49_v9, 0.0 }
  0x94   :  { %52 = vadd.xlane.f32.xlu1 %v51_v11 }
  0x95   :  { %v50_v12 = vmul.f32 %v48_v10, %v48_v10 }
  0x97   :  { %v54_v13 = vsel %vm37_vm0, %v50_v12, 0.0 }
  0x98   :  { %55 = vadd.xlane.f32.xlu1 %v54_v13 }
 0x11d   :  { %v53_v18 = vpop.xlane.xlu1 %52 }
 0x11e   :  { %v57_v19 = vmul.f32 0.03125, %v53_v18 }
 0x120   :  { %v59_v20 = vadd.f32 1e-12, %v57_v19 }
 0x121   :  { %v56_v21 = vpop.xlane.xlu1 %55 }
 0x122   :  { %2888 = vrsqrt.f32 %v59_v20  ;;  %v58_v22 = vmul.f32 0.03125, %v56_v21 }
 0x124   :  { %v60_v23 = vadd.f32 1e-12, %v58_v22 }
 0x126   :  { %2890 = vrsqrt.f32 %v60_v23 }
 0x12f   :  { %v2889_v24 = vpop.eup %2888 }
 0x130   :  { %v63_v26 = vmul.f32 %v2889_v24, %v47_v6 }
 0x132   :  { %v69_v28 = vmul.f32 %v2523_v25, %v63_v26 }
 0x133   :  { %v2891_v29 = vpop.eup %2890 }
 0x134   :  { %v64_v30 = vmul.f32 %v2891_v29, %v48_v10  ;;  %v3058_v31 = vadd.f32 %v2524_v27, %v69_v28 }
 0x136   :  { %v70_v32 = vmul.f32 %v2523_v25, %v64_v30  ;;  %77 = vst.msk [vmem:[#allocation2] sm:$0xff] %vm37_vm0, %v3058_v31  ;;  %2696 = vmatprep.mubr.msk.f32.mxu0 %vm37_vm0, %v3058_v31 }
 0x138   :  { %v3064_v33 = vadd.f32 %v2524_v27, %v70_v32  ;;  %v172_v27 = vld [vmem:[%s3449_s4 + $0x8] sm:$0xff] }
 0x13a   :  { %78 = vst.msk [vmem:[#allocation2 + $0x18] sm:$0xff] %vm37_vm0, %v3064_v33  ;;  %2697 = vmatmul.mubr.msk.f32.vlgmr.msra.gmra.mxu0 %vm37_vm0, %v3064_v33 }
 0x13b   :  { %2701 = vmatprep.mubr.msk.f32.mxu0 %vm2971_vm1, %v2970_v34 }
 0x1fa   :  { %v2698_v36 = vpop.f32.mrf.mxu0 }
 0x1fb   :  { %v3079_v37 = vadd.f32 %v2698_v36, %v2525_v35  ;;  %v171_v36 = vld [vmem:[%s3449_s4] sm:$0xff] }
 0x1fc   :  { %v162_v38 = vpop.f32.mrf.mxu0 }
 0x1fd   :  { %v3081_v39 = vadd.f32 %v2525_v35, %v162_v38  ;;  %255 = vrot.lane.b32.xlu1 %v3079_v37, %s2972_s25 }
 0x1ff   :  { %177 = vrot.lane.b32.xlu0 %v3081_v39, %s2972_s25 }
 0x26f   :  { %v256_v40 = vpop.permute.xlu1 %255 }
 0x270   :  { %2705 = vmatpush3.xpose.msk.msra.mxu1 %vm179_vm2, %v256_v40  ;;  %v173_v40 = vld [vmem:[%s3449_s4 + $0x10] sm:$0xff] }
 0x271   :  { %v178_v41 = vpop.permute.xlu0 %177  ;;  %2714 = vmatprep.subr.mxu1 %v2970_v34 }
 0x272   :  { %2700 = vmatpush3.xpose.msk.msra.mxu0 %vm179_vm2, %v178_v41 }
 0x273   :  { %2707 = vmatmul.mubr.msk.f32.vlgmr.msra.gmra.mxu1 %vm179_vm2, %v3079_v37  ;;  %2709 = vmatprep.subr.mxu0 %v2970_v34 }
 0x274   :  { %2716 = vmatprep.mubr.msk.f32.mxu1 %vm2971_vm1, %v2970_v34 }
 0x275   :  { %2702 = vmatmul.mubr.msk.f32.vlgmr.msra.gmra.mxu0 %vm179_vm2, %v3081_v39 }
 0x276   :  { %2711 = vmatprep.mubr.msk.f32.mxu0 %vm2971_vm1, %v2970_v34 }
 0x333   :  { %v327_v42 = vpop.f32.mrf.mxu1 }
 0x334   :  { %v335_v43 = vsel %vm331_vm3, %v327_v42, -inf }
 0x335   :  { %v2708_v44 = vpop.f32.mrf.mxu1  ;;  %336 = vmax.xlane.f32.xlu0 %v335_v43  ;;  %v250_v45 = vpop.f32.mrf.mxu0 }
 0x336   :  { %v332_v46 = vsel %vm331_vm3, %v250_v45, -inf }
 0x337   :  { %333 = vmax.xlane.f32.xlu1 %v332_v46  ;;  %v2703_v47 = vpop.f32.mrf.mxu0 }
 0x3be   :  { %v337_v48 = vpop.xlane.xlu0 %336 }
 0x3bf   :  { %v339_v49 = vsub.f32 %v327_v42, %v337_v48 }
 0x3c0   :  { %v334_v50 = vpop.xlane.xlu1 %333 }
 0x3c1   :  { %v342_v51 = vmul.f32 1.442695, %v339_v49  ;;  %v338_v52 = vsub.f32 %v250_v45, %v334_v50  ;;  %v1000_v45 = vlaneseq  ;;  %v3165_v49 = vld [vmem:[%s3450_s5] sm:$0x3f] }
 0x3c3   :  { %2892 = vpow2.f32 %v342_v51  ;;  %v340_v53 = vmul.f32 1.442695, %v338_v52  ;;  %v3159_v46 = vshrl.u32 %v1000_v45, 7 }
 0x3c5   :  { %2894 = vpow2.f32 %v340_v53  ;;  %v1002_v47 = vsub.s32 0, %v3159_v46 }
 0x3c7   :  { %v1003_v52 = vrot.slane %v3165_v49, %v1002_v47 }
 0x3d0   :  { %v2893_v54 = vpop.eup %2892 }
 0x3d1   :  { %v347_v55 = vsel %vm331_vm3, %v2893_v54, 0.0 }
 0x3d2   :  { %v2895_v56 = vpop.eup %2894  ;;  %348 = vadd.xlane.f32.xlu1 %v347_v55 }
 0x3d3   :  { %v344_v57 = vsel %vm331_vm3, %v2895_v56, 0.0 }
 0x3d4   :  { %345 = vadd.xlane.f32.xlu0 %v344_v57 }
 0x3e3   :  { %430 = vrot.lane.b32.xlu1 %v3079_v37, %s2973_s26 }
 0x3e7   :  { %508 = vrot.lane.b32.xlu1 %v3081_v39, %s2974_s27 }
 0x3ea   :  { %354 = vrot.lane.b32.xlu0 %v3081_v39, %s2973_s26 }
 0x3eb   :  { %586 = vrot.lane.b32.xlu1 %v3079_v37, %s2974_s27 }
 0x3ee   :  { %506 = vrot.lane.b32.xlu0 %v3081_v39, %s2975_s28 }
 0x3ef   :  { %584 = vrot.lane.b32.xlu1 %v3079_v37, %s2975_s28 }
 0x45b   :  { %v349_v58 = vpop.xlane.xlu1 %348 }
 0x45c   :  { %2896 = vrcp.f32 %v349_v58 }
 0x45d   :  { %v346_v59 = vpop.xlane.xlu0 %345 }
 0x45e   :  { %2898 = vrcp.f32 %v346_v59 }
 0x45f   :  { %v431_v60 = vpop.permute.xlu1 %430 }
 0x460   :  { %2715 = vmatpush3.msra.mxu1 %v431_v60 }
 0x461   :  { %v355_v61 = vpop.permute.xlu0 %354  ;;  %2724 = vmatprep.subr.mxu1 %v2970_v34 }
 0x462   :  { %2710 = vmatpush3.msra.mxu0 %v355_v61 }
 0x463   :  { %v509_v62 = vpop.permute.xlu1 %508  ;;  %2719 = vmatprep.subr.mxu0 %v2970_v34 }
 0x465   :  { %v507_v5 = vpop.permute.xlu0 %506 }
 0x467   :  { %v587_v0 = vpop.permute.xlu1 %586 }
 0x469   :  { %v2897_v63 = vpop.eup %2896 }
 0x46a   :  { %v353_v1 = vmul.f32 %v2897_v63, %v2893_v54 }
 0x46b   :  { %v2899_v2 = vpop.eup %2898  ;;  %v585_v4 = vpop.permute.xlu1 %584 }
 0x46c   :  { %2717 = vmatmul.mubr.msk.f32.vlgmr.msra.gmra.mxu1 %vm331_vm3, %v353_v1  ;;  %v352_v3 = vmul.f32 %v2899_v2, %v2895_v56 }
 0x46d   :  { %2725 = vmatpush3.xpose.msk.msra.mxu1 %vm179_vm2, %v587_v0  ;;  %2726 = vmatprep.mubr.msk.f32.mxu1 %vm2971_vm1, %v2970_v34 }
 0x46e   :  { %2712 = vmatmul.mubr.msk.f32.vlgmr.msra.gmra.mxu0 %vm331_vm3, %v352_v3  ;;  %2734 = vmatprep.subr.mxu1 %v2970_v34 }
 0x46f   :  { %2720 = vmatpush3.xpose.msk.msra.mxu0 %vm179_vm2, %v509_v62  ;;  %2721 = vmatprep.mubr.msk.f32.mxu0 %vm2971_vm1, %v2970_v34 }
 0x470   :  { %2727 = vmatmul.mubr.msk.f32.vlgmr.msra.gmra.mxu1 %vm179_vm2, %v585_v4  ;;  %2729 = vmatprep.subr.mxu0 %v2970_v34 }
 0x471   :  { %2736 = vmatprep.mubr.msk.f32.mxu1 %vm2971_vm1, %v2970_v34 }
 0x472   :  { %2722 = vmatmul.mubr.msk.f32.vlgmr.msra.gmra.mxu0 %vm179_vm2, %v507_v5 }
 0x473   :  { %2731 = vmatprep.mubr.msk.f32.mxu0 %vm2971_vm1, %v2970_v34 }
 0x52c   :  { %v502_v6 = vpop.f32.mrf.mxu1 }
 0x52e   :  { %v426_v7 = vpop.f32.mrf.mxu0  ;;  %v2718_v8 = vpop.f32.mrf.mxu1 }
 0x52f   :  { %v1045_v8 = vld [vmem:[%s3451_s6 + $0x8] sm:$0xff] }
 0x530   :  { %v2713_v9 = vpop.f32.mrf.mxu0  ;;  %v658_v10 = vpop.f32.mrf.mxu1 }
 0x531   :  { %v665_v11 = vsel %vm331_vm3, %v658_v10, -inf  ;;  %v1044_v9 = vld [vmem:[%s3451_s6] sm:$0xff] }
 0x532   :  { %666 = vmax.xlane.f32.xlu1 %v665_v11  ;;  %v580_v12 = vpop.f32.mrf.mxu0  ;;  %v2728_v13 = vpop.f32.mrf.mxu1 }
 0x533   :  { %v662_v14 = vsel %vm331_vm3, %v580_v12, -inf }
 0x534   :  { %663 = vmax.xlane.f32.xlu0 %v662_v14  ;;  %v2723_v15 = vpop.f32.mrf.mxu0 }
 0x543   :  { %760 = vrot.lane.b32.xlu1 %v3079_v37, %s2976_s29 }
 0x5bb   :  { %v667_v16 = vpop.xlane.xlu1 %666 }
 0x5bc   :  { %v669_v17 = vsub.f32 %v658_v10, %v667_v16  ;;  %v1034_v16 = vsub.s32 1, %v3159_v46 }
 0x5bd   :  { %v664_v18 = vpop.xlane.xlu0 %663 }
 0x5be   :  { %v672_v19 = vmul.f32 1.442695, %v669_v17  ;;  %v668_v20 = vsub.f32 %v580_v12, %v664_v18  ;;  %v1035_v18 = vrot.slane %v3165_v49, %v1034_v16 }
 0x5bf   :  { %v761_v21 = vpop.permute.xlu1 %760 }
 0x5c0   :  { %2900 = vpow2.f32 %v672_v19  ;;  %v670_v22 = vmul.f32 1.442695, %v668_v20  ;;  %2735 = vmatpush3.msra.mxu1 %v761_v21  ;;  %v1040_v19 = vsub.s32 2, %v3159_v46 }
 0x5c1   :  { %2746 = vmatprep.subr.mxu1 %v172_v27 }
 0x5c2   :  { %2902 = vpow2.f32 %v670_v22 }
 0x5cd   :  { %v2901_v23 = vpop.eup %2900 }
 0x5ce   :  { %v677_v24 = vsel %vm331_vm3, %v2901_v23, 0.0 }
 0x5cf   :  { %v2903_v25 = vpop.eup %2902  ;;  %678 = vadd.xlane.f32.xlu0 %v677_v24  ;;  %v1041_v24 = vrot.slane %v3165_v49, %v1040_v19 }
 0x5d0   :  { %v674_v26 = vsel %vm331_vm3, %v2903_v25, 0.0 }
 0x5d3   :  { %675 = vadd.xlane.f32.xlu0 %v674_v26 }
 0x5e9   :  { %684 = vrot.lane.b32.xlu0 %v3081_v39, %s2976_s29  ;;  %v174_v39 = vld [vmem:[%s3449_s4 + $0x18] sm:$0xff] }
 0x658   :  { %v679_v28 = vpop.xlane.xlu0 %678 }
 0x659   :  { %2904 = vrcp.f32 %v679_v28  ;;  %v1161_v28 = vld [vmem:[%s3453_s8 + $0x38] sm:$0xff] }
 0x65c   :  { %v676_v29 = vpop.xlane.xlu0 %675 }
 0x65d   :  { %2906 = vrcp.f32 %v676_v29  ;;  %v1160_v29 = vld [vmem:[%s3453_s8 + $0x30] sm:$0xff] }
 0x660   :  { %v685_v30 = vpop.permute.xlu0 %684 }
 0x661   :  { %2730 = vmatpush3.msra.mxu0 %v685_v30  ;;  %v1159_v30 = vld [vmem:[%s3453_s8 + $0x28] sm:$0xff] }
 0x662   :  { %2739 = vmatprep.subr.mxu0 %v174_v39 }
 0x666   :  { %v2905_v32 = vpop.eup %2904 }
 0x667   :  { %v683_v35 = vmul.f32 %v2905_v32, %v2901_v23  ;;  %v1158_v32 = vld [vmem:[%s3453_s8 + $0x20] sm:$0xff] }
 0x669   :  { %2737 = vmatmul.mubr.msk.f32.vlgmr.msra.gmra.mxu1 %vm331_vm3, %v683_v35  ;;  %v1157_v35 = vld [vmem:[%s3453_s8 + $0x18] sm:$0xff] }
 0x66a   :  { %v2907_v37 = vpop.eup %2906  ;;  %2747 = vmatpush3.msra.mxu1 %v172_v27  ;;  %2750 = vmatprep.mubr.msk.f32.mxu1 %vm179_vm2, %v426_v7  ;;  %v1046_v7 = vld [vmem:[%s3451_s6 + $0x10] sm:$0xff] }
 0x66b   :  { %2748 = vmatprep.subr.mxu1 %v171_v36  ;;  %v682_v38 = vmul.f32 %v2907_v37, %v2903_v25  ;;  %v1155_v37 = vld [vmem:[%s3453_s8 + $0x8] sm:$0xff] }
 0x66c   :  { %2749 = vmatpush3.msra.mxu1 %v171_v36  ;;  %v1156_v36 = vld [vmem:[%s3453_s8 + $0x10] sm:$0xff] }
 0x66d   :  { %2732 = vmatmul.mubr.msk.f32.vlgmr.msra.gmra.mxu0 %vm331_vm3, %v682_v38  ;;  %2751 = vmatmul.mubr.msk.f32.vlgmr.msra.gmra.mxu1 %vm179_vm2, %v502_v6  ;;  %v1047_v6 = vld [vmem:[%s3451_s6 + $0x18] sm:$0xff]  ;;  %v1154_v38 = vld [vmem:[%s3453_s8] sm:$0xff] }
 0x66e   :  { %2740 = vmatpush3.msra.mxu0 %v174_v39  ;;  %2764 = vmatprep.subr.mxu1 %v1161_v28  ;;  %v2544_v39 = vld [vmem:[%s3452_s7] ss:$0 sm:$0xff] }
 0x66f   :  { %2741 = vmatprep.subr.mxu0 %v173_v40  ;;  %2765 = vmatpush3.msra.mxu1 %v1161_v28 }
 0x670   :  { %2742 = vmatpush3.msra.mxu0 %v173_v40  ;;  %2766 = vmatprep.subr.mxu1 %v1160_v29 }
 0x671   :  { %2753 = vmatprep.subr.mxu0 %v1047_v6  ;;  %2767 = vmatpush3.msra.mxu1 %v1160_v29 }
 0x672   :  { %2768 = vmatprep.subr.mxu1 %v1159_v30 }
 0x673   :  { %2769 = vmatpush3.msra.mxu1 %v1159_v30 }
 0x674   :  { %2770 = vmatprep.subr.mxu1 %v1158_v32 }
 0x675   :  { %2771 = vmatpush3.msra.mxu1 %v1158_v32  ;;  %v1278_v32 = vsub.s32 4, %v3159_v46 }
 0x676   :  { %2772 = vmatprep.subr.mxu1 %v1157_v35 }
 0x677   :  { %2773 = vmatpush3.msra.mxu1 %v1157_v35  ;;  %v1284_v35 = vsub.s32 5, %v3159_v46 }
 0x678   :  { %2774 = vmatprep.subr.mxu1 %v1156_v36 }
 0x679   :  { %2775 = vmatpush3.msra.mxu1 %v1156_v36  ;;  %v1279_v36 = vrot.slane %v3165_v49, %v1278_v32 }
 0x67a   :  { %2776 = vmatprep.subr.mxu1 %v1155_v37 }
 0x67b   :  { %2777 = vmatpush3.msra.mxu1 %v1155_v37 }
 0x67c   :  { %2778 = vmatprep.subr.mxu1 %v1154_v38 }
 0x67d   :  { %2779 = vmatpush3.msra.mxu1 %v1154_v38 }
 0x67e   :  { %2799 = vmatprep.subr.mxu1 %v2970_v34 }
 0x729   :  { %v832_v41 = vpop.f32.mrf.mxu1 }
 0x72b   :  { %v2738_v42 = vpop.f32.mrf.mxu1 }
 0x72d   :  { %v756_v43 = vpop.f32.mrf.mxu0  ;;  %v2752_v48 = vpop.f32.mrf.mxu1 }
 0x72e   :  { %2743 = vmatprep.mubr.msk.f32.mxu0 %vm179_vm2, %v756_v43 }
 0x72f   :  { %v2733_v44 = vpop.f32.mrf.mxu0  ;;  %2744 = vmatmul.mubr.msk.f32.vlgmr.msra.gmra.mxu0 %vm179_vm2, %v832_v41  ;;  %v989_v53 = vpop.f32.mrf.mxu1 }
 0x730   :  { %2754 = vmatpush3.msra.mxu0 %v1047_v6 }
 0x731   :  { %2755 = vmatprep.subr.mxu0 %v1046_v7 }
 0x732   :  { %2756 = vmatpush3.msra.mxu0 %v1046_v7 }
 0x733   :  { %2757 = vmatprep.subr.mxu0 %v1045_v8 }
 0x734   :  { %2758 = vmatpush3.msra.mxu0 %v1045_v8 }
 0x735   :  { %2759 = vmatprep.subr.mxu0 %v1044_v9 }
 0x736   :  { %2760 = vmatpush3.msra.mxu0 %v1044_v9 }
 0x7ef   :  { %v2745_v50 = vpop.f32.mrf.mxu0 }
 0x7f0   :  { %v995_v51 = vadd.f32 %v2752_v48, %v2745_v50 }
 0x7f1   :  { %v908_v54 = vpop.f32.mrf.mxu0 }
 0x7f2   :  { %v999_v55 = vadd.f32 %v995_v51, %v3064_v33  ;;  %v990_v56 = vadd.f32 %v989_v53, %v908_v54 }
 0x7f4   :  { %v998_v57 = vadd.f32 %v990_v56, %v3058_v31  ;;  %v1005_v58 = vadd.f32 %v1003_v52, %v999_v55 }
 0x7f6   :  { %v1009_v59 = vsel %vm37_vm0, %v1005_v58, 0.0  ;;  %v1004_v60 = vadd.f32 %v1003_v52, %v998_v57 }
 0x7f7   :  { %1010 = vadd.xlane.f32.xlu0 %v1009_v59 }
 0x7f8   :  { %v1006_v61 = vsel %vm37_vm0, %v1004_v60, 0.0 }
 0x7f9   :  { %1007 = vadd.xlane.f32.xlu1 %v1006_v61 }
 0x880   :  { %v1011_v62 = vpop.xlane.xlu0 %1010 }
 0x881   :  { %v1013_v63 = vmul.f32 0.03125, %v1011_v62 }
 0x882   :  { %v1008_v0 = vpop.xlane.xlu1 %1007 }
 0x883   :  { %v1015_v1 = vsub.f32 %v1005_v58, %v1013_v63  ;;  %v1012_v2 = vmul.f32 0.03125, %v1008_v0 }
 0x885   :  { %v1014_v3 = vsub.f32 %v1004_v60, %v1012_v2  ;;  %v1017_v4 = vmul.f32 %v1015_v1, %v1015_v1 }
 0x887   :  { %v1021_v33 = vsel %vm37_vm0, %v1017_v4, 0.0  ;;  %v1016_v5 = vmul.f32 %v1014_v3, %v1014_v3 }
 0x888   :  { %1022 = vadd.xlane.f32.xlu1 %v1021_v33 }
 0x889   :  { %v1018_v31 = vsel %vm37_vm0, %v1016_v5, 0.0 }
 0x88a   :  { %1019 = vadd.xlane.f32.xlu0 %v1018_v31 }
 0x911   :  { %v1023_v10 = vpop.xlane.xlu1 %1022 }
 0x912   :  { %v1025_v11 = vmul.f32 0.03125, %v1023_v10 }
 0x913   :  { %v1020_v12 = vpop.xlane.xlu0 %1019 }
 0x914   :  { %v1027_v13 = vadd.f32 1e-12, %v1025_v11  ;;  %v1024_v14 = vmul.f32 0.03125, %v1020_v12 }
 0x916   :  { %2908 = vrsqrt.f32 %v1027_v13  ;;  %v1026_v15 = vadd.f32 1e-12, %v1024_v14 }
 0x918   :  { %2910 = vrsqrt.f32 %v1026_v15 }
 0x923   :  { %v2909_v17 = vpop.eup %2908 }
 0x924   :  { %v1031_v20 = vmul.f32 %v2909_v17, %v1015_v1  ;;  %v1164_v1 = vsub.s32 3, %v3159_v46 }
 0x925   :  { %v2911_v21 = vpop.eup %2910 }
 0x926   :  { %v1030_v22 = vmul.f32 %v2911_v21, %v1014_v3  ;;  %v1037_v23 = vmul.f32 %v1035_v18, %v1031_v20  ;;  %v1165_v2 = vrot.slane %v3165_v49, %v1164_v1  ;;  %v2552_v21 = vld [vmem:[%s3447_s2 + $0x38] sm:$0xff] }
 0x927   :  { %2783 = vmatprep.subr.mxu0 %v2552_v21 }
 0x928   :  { %v1036_v25 = vmul.f32 %v1035_v18, %v1030_v22  ;;  %v3198_v27 = vadd.f32 %v1041_v24, %v1037_v23  ;;  %v2551_v22 = vld [vmem:[%s3447_s2 + $0x30] sm:$0xff]  ;;  %v2550_v23 = vld [vmem:[%s3447_s2 + $0x28] sm:$0xff] }
 0x92a   :  { %v3196_v26 = vadd.f32 %v1041_v24, %v1036_v25  ;;  %v2549_v24 = vld [vmem:[%s3447_s2 + $0x20] sm:$0xff] }
 0x92c   :  { %2761 = vmatprep.mubr.msk.f32.mxu0 %vm37_vm0, %v3196_v26 }
 0x92d   :  { %2762 = vmatmul.mubr.msk.f32.vlgmr.msra.gmra.mxu0 %vm37_vm0, %v3198_v27 }
 0x92e   :  { %2784 = vmatpush3.msra.mxu0 %v2552_v21 }
 0x92f   :  { %2785 = vmatprep.subr.mxu0 %v2551_v22 }
 0x930   :  { %2786 = vmatpush3.msra.mxu0 %v2551_v22 }
 0x931   :  { %2787 = vmatprep.subr.mxu0 %v2550_v23 }
 0x932   :  { %2788 = vmatpush3.msra.mxu0 %v2550_v23 }
 0x933   :  { %2789 = vmatprep.subr.mxu0 %v2549_v24 }
 0x934   :  { %2790 = vmatpush3.msra.mxu0 %v2549_v24 }
 0x935   :  { %2794 = vmatprep.subr.mxu0 %v2970_v34 }
 0x9ed   :  { %v2763_v40 = vpop.f32.mrf.mxu0 }
 0x9ee   :  { %v1133_v41 = vadd.f32 %v2763_v40, %v2544_v39 }
 0x9ef   :  { %v1127_v42 = vpop.f32.mrf.mxu0 }
 0x9f0   :  { %v1137_v43 = vmul.f32 %v1133_v41, %v1133_v41  ;;  %v1128_v44 = vadd.f32 %v2544_v39, %v1127_v42  ;;  %v1285_v39 = vrot.slane %v3165_v49, %v1284_v35  ;;  %v2554_v49 = vld [vmem:[%s3448_s3 + $0x1] ss:$0 sm:$0xff] }
 0x9f2   :  { %v1139_v45 = vmul.f32 %v1137_v43, %v1133_v41  ;;  %v1136_v48 = vmul.f32 %v1128_v44, %v1128_v44 }
 0x9f4   :  { %v1141_v50 = vmul.f32 0.044715, %v1139_v45  ;;  %v1138_v51 = vmul.f32 %v1136_v48, %v1128_v44 }
 0x9f6   :  { %v1143_v52 = vadd.f32 %v1141_v50, %v1133_v41  ;;  %v1140_v53 = vmul.f32 0.044715, %v1138_v51 }
 0x9f8   :  { %v1145_v54 = vmul.f32 0.7978846, %v1143_v52  ;;  %v1142_v55 = vadd.f32 %v1140_v53, %v1128_v44 }
 0x9fa   :  { %2912 = vtanh.f32 %v1145_v54  ;;  %v1144_v56 = vmul.f32 0.7978846, %v1142_v55 }
 0x9fc   :  { %2914 = vtanh.f32 %v1144_v56 }
 0xa07   :  { %v2913_v57 = vpop.eup %2912 }
 0xa08   :  { %v1149_v58 = vadd.f32 1.0, %v2913_v57 }
 0xa09   :  { %v2915_v59 = vpop.eup %2914 }
 0xa0a   :  { %v1148_v60 = vadd.f32 1.0, %v2915_v59  ;;  %v1151_v61 = vmul.f32 0.5, %v1149_v58 }
 0xa0c   :  { %v1150_v62 = vmul.f32 0.5, %v1148_v60  ;;  %v1153_v0 = vmul.f32 %v1151_v61, %v1133_v41 }
 0xa0e   :  { %v1152_v63 = vmul.f32 %v1150_v62, %v1128_v44 }
 0xa10   :  { %2780 = vmatprep.mubr.msk.f32.mxu1 %vm1166_vm4, %v1152_v63 }
 0xa11   :  { %2781 = vmatmul.mubr.msk.f32.vlgmr.msra.gmra.mxu1 %vm1166_vm4, %v1153_v0 }
 0xa12   :  { %2801 = vmatprep.mubr.msk.f32.mxu1 %vm2971_vm1, %v2970_v34 }
 0xad1   :  { %v2782_v3 = vpop.f32.mrf.mxu1 }
 0xad2   :  { %v1245_v4 = vadd.f32 %v2782_v3, %v1165_v2 }
 0xad3   :  { %v1239_v33 = vpop.f32.mrf.mxu1 }
 0xad4   :  { %v1240_v5 = vadd.f32 %v1239_v33, %v1165_v2  ;;  %v1249_v31 = vadd.f32 %v1245_v4, %v3198_v27 }
 0xad6   :  { %v1253_v6 = vsel %vm37_vm0, %v1249_v31, 0.0  ;;  %v1248_v7 = vadd.f32 %v1240_v5, %v3196_v26 }
 0xad7   :  { %1254 = vadd.xlane.f32.xlu1 %v1253_v6 }
 0xad8   :  { %v1250_v8 = vsel %vm37_vm0, %v1248_v7, 0.0 }
 0xad9   :  { %1251 = vadd.xlane.f32.xlu0 %v1250_v8 }
 0xb60   :  { %v1255_v9 = vpop.xlane.xlu1 %1254 }
 0xb61   :  { %v1257_v10 = vmul.f32 0.03125, %v1255_v9 }
 0xb62   :  { %v1252_v11 = vpop.xlane.xlu0 %1251 }
 0xb63   :  { %v1259_v12 = vsub.f32 %v1249_v31, %v1257_v10  ;;  %v1256_v13 = vmul.f32 0.03125, %v1252_v11 }
 0xb65   :  { %v1258_v14 = vsub.f32 %v1248_v7, %v1256_v13  ;;  %v1261_v15 = vmul.f32 %v1259_v12, %v1259_v12 }
 0xb67   :  { %v1265_v17 = vsel %vm37_vm0, %v1261_v15, 0.0  ;;  %v1260_v18 = vmul.f32 %v1258_v14, %v1258_v14 }
 0xb68   :  { %1266 = vadd.xlane.f32.xlu1 %v1265_v17 }
 0xb69   :  { %v1262_v20 = vsel %vm37_vm0, %v1260_v18, 0.0 }
 0xb6a   :  { %1263 = vadd.xlane.f32.xlu0 %v1262_v20 }
 0xbf1   :  { %v1267_v25 = vpop.xlane.xlu1 %1266 }
 0xbf2   :  { %v1269_v26 = vmul.f32 0.03125, %v1267_v25 }
 0xbf3   :  { %v1264_v27 = vpop.xlane.xlu0 %1263 }
 0xbf4   :  { %v1271_v28 = vadd.f32 1e-12, %v1269_v26  ;;  %v1268_v29 = vmul.f32 0.03125, %v1264_v27 }
 0xbf6   :  { %2916 = vrsqrt.f32 %v1271_v28  ;;  %v1270_v30 = vadd.f32 1e-12, %v1268_v29 }
 0xbf8   :  { %2918 = vrsqrt.f32 %v1270_v30 }
 0xc03   :  { %v2917_v37 = vpop.eup %2916 }
 0xc04   :  { %v1275_v38 = vmul.f32 %v2917_v37, %v1259_v12 }
 0xc05   :  { %v2919_v40 = vpop.eup %2918 }
 0xc06   :  { %v1274_v41 = vmul.f32 %v2919_v40, %v1258_v14  ;;  %v1281_v42 = vmul.f32 %v1279_v36, %v1275_v38 }
 0xc08   :  { %v1280_v43 = vmul.f32 %v1279_v36, %v1274_v41  ;;  %v3267_v44 = vadd.f32 %v1285_v39, %v1281_v42 }
 0xc0a   :  { %v3269_v45 = vadd.f32 %v1285_v39, %v1280_v43  ;;  %1290 = vst.msk [vmem:[#allocation2 + $0x20] sm:$0xff] %vm37_vm0, %v3267_v44 }
 0xc0c   :  { %1289 = vst.msk [vmem:[#allocation2 + $0x8] sm:$0xff] %vm37_vm0, %v3269_v45  ;;  %2791 = vmatprep.mubr.msk.f32.mxu0 %vm37_vm0, %v3269_v45 }
 0xc0d   :  { %2792 = vmatmul.mubr.msk.f32.vlgmr.msra.gmra.mxu0 %vm37_vm0, %v3267_v44 }
 0xc0e   :  { %2796 = vmatprep.mubr.msk.f32.mxu0 %vm2971_vm1, %v2970_v34 }
 0xccd   :  { %v2793_v48 = vpop.f32.mrf.mxu0 }
 0xcce   :  { %v3284_v50 = vadd.f32 %v2793_v48, %v2554_v49  ;;  %v2558_v48 = vld [vmem:[%s3449_s4 + $0x28] sm:$0xff] }
 0xccf   :  { %v1376_v51 = vpop.f32.mrf.mxu0 }
 0xcd0   :  { %v3286_v52 = vadd.f32 %v2554_v49, %v1376_v51  ;;  %1470 = vrot.lane.b32.xlu1 %v3284_v50, %s2972_s25 }
 0xcd2   :  { %1393 = vrot.lane.b32.xlu0 %v3286_v52, %s2972_s25 }
 0xd42   :  { %v1471_v53 = vpop.permute.xlu1 %1470 }
 0xd43   :  { %2800 = vmatpush3.xpose.msk.msra.mxu1 %vm179_vm2, %v1471_v53 }
 0xd44   :  { %v1394_v54 = vpop.permute.xlu0 %1393  ;;  %2809 = vmatprep.subr.mxu1 %v2970_v34 }
 0xd45   :  { %2795 = vmatpush3.xpose.msk.msra.mxu0 %vm179_vm2, %v1394_v54 }
 0xd46   :  { %2802 = vmatmul.mubr.msk.f32.vlgmr.msra.gmra.mxu1 %vm179_vm2, %v3284_v50  ;;  %2804 = vmatprep.subr.mxu0 %v2970_v34 }
 0xd47   :  { %2811 = vmatprep.mubr.msk.f32.mxu1 %vm2971_vm1, %v2970_v34 }
 0xd48   :  { %2797 = vmatmul.mubr.msk.f32.vlgmr.msra.gmra.mxu0 %vm179_vm2, %v3286_v52 }
 0xd49   :  { %2806 = vmatprep.mubr.msk.f32.mxu0 %vm2971_vm1, %v2970_v34 }
 0xe06   :  { %v1542_v55 = vpop.f32.mrf.mxu1 }
 0xe07   :  { %v1549_v56 = vsel %vm331_vm3, %v1542_v55, -inf }
 0xe08   :  { %v2803_v57 = vpop.f32.mrf.mxu1  ;;  %1550 = vmax.xlane.f32.xlu0 %v1549_v56  ;;  %v1465_v58 = vpop.f32.mrf.mxu0  ;;  %v2557_v56 = vld [vmem:[%s3449_s4 + $0x20] sm:$0xff] }
 0xe09   :  { %v1546_v59 = vsel %vm331_vm3, %v1465_v58, -inf }
 0xe0a   :  { %1547 = vmax.xlane.f32.xlu1 %v1546_v59  ;;  %v2798_v60 = vpop.f32.mrf.mxu0  ;;  %v2559_v59 = vld [vmem:[%s3449_s4 + $0x30] sm:$0xff] }
 0xe91   :  { %v1551_v61 = vpop.xlane.xlu0 %1550 }
 0xe92   :  { %v1553_v62 = vsub.f32 %v1542_v55, %v1551_v61 }
 0xe93   :  { %v1548_v63 = vpop.xlane.xlu1 %1547 }
 0xe94   :  { %v1556_v0 = vmul.f32 1.442695, %v1553_v62  ;;  %v1552_v2 = vsub.f32 %v1465_v58, %v1548_v63  ;;  %v2560_v58 = vld [vmem:[%s3449_s4 + $0x38] sm:$0xff] }
 0xe96   :  { %2920 = vpow2.f32 %v1556_v0  ;;  %v1554_v3 = vmul.f32 1.442695, %v1552_v2  ;;  %v3367_v0 = vld [vmem:[%s3450_s5 + $0x8] sm:$0x3f] }
 0xe98   :  { %2922 = vpow2.f32 %v1554_v3 }
 0xea3   :  { %v2921_v4 = vpop.eup %2920 }
 0xea4   :  { %v1561_v33 = vsel %vm331_vm3, %v2921_v4, 0.0 }
 0xea5   :  { %v2923_v5 = vpop.eup %2922  ;;  %1562 = vadd.xlane.f32.xlu1 %v1561_v33  ;;  %v2217_v33 = vrot.slane %v3367_v0, %v1002_v47 }
 0xea6   :  { %v1558_v31 = vsel %vm331_vm3, %v2923_v5, 0.0 }
 0xea7   :  { %1559 = vadd.xlane.f32.xlu0 %v1558_v31 }
 0xeb6   :  { %1644 = vrot.lane.b32.xlu1 %v3284_v50, %s2973_s26 }
 0xeba   :  { %1722 = vrot.lane.b32.xlu1 %v3286_v52, %s2974_s27 }
 0xebd   :  { %1568 = vrot.lane.b32.xlu0 %v3286_v52, %s2973_s26 }
 0xebe   :  { %1800 = vrot.lane.b32.xlu1 %v3284_v50, %s2974_s27 }
 0xec1   :  { %1720 = vrot.lane.b32.xlu0 %v3286_v52, %s2975_s28 }
 0xec2   :  { %1798 = vrot.lane.b32.xlu1 %v3284_v50, %s2975_s28 }
 0xf2e   :  { %v1563_v6 = vpop.xlane.xlu1 %1562 }
 0xf2f   :  { %2924 = vrcp.f32 %v1563_v6 }
 0xf30   :  { %v1560_v7 = vpop.xlane.xlu0 %1559 }
 0xf31   :  { %2926 = vrcp.f32 %v1560_v7 }
 0xf32   :  { %v1645_v8 = vpop.permute.xlu1 %1644 }
 0xf33   :  { %2810 = vmatpush3.msra.mxu1 %v1645_v8 }
 0xf34   :  { %v1569_v9 = vpop.permute.xlu0 %1568  ;;  %2819 = vmatprep.subr.mxu1 %v2970_v34 }
 0xf35   :  { %2805 = vmatpush3.msra.mxu0 %v1569_v9 }
 0xf36   :  { %v1723_v10 = vpop.permute.xlu1 %1722  ;;  %2814 = vmatprep.subr.mxu0 %v2970_v34 }
 0xf38   :  { %v1721_v18 = vpop.permute.xlu0 %1720 }
 0xf3a   :  { %v1801_v12 = vpop.permute.xlu1 %1800 }
 0xf3c   :  { %v2925_v11 = vpop.eup %2924 }
 0xf3d   :  { %v1567_v13 = vmul.f32 %v2925_v11, %v2921_v4 }
 0xf3e   :  { %v2927_v14 = vpop.eup %2926  ;;  %v1799_v17 = vpop.permute.xlu1 %1798 }
 0xf3f   :  { %2812 = vmatmul.mubr.msk.f32.vlgmr.msra.gmra.mxu1 %vm331_vm3, %v1567_v13  ;;  %v1566_v15 = vmul.f32 %v2927_v14, %v2923_v5 }
 0xf40   :  { %2820 = vmatpush3.xpose.msk.msra.mxu1 %vm179_vm2, %v1801_v12  ;;  %2821 = vmatprep.mubr.msk.f32.mxu1 %vm2971_vm1, %v2970_v34 }
 0xf41   :  { %2807 = vmatmul.mubr.msk.f32.vlgmr.msra.gmra.mxu0 %vm331_vm3, %v1566_v15  ;;  %2829 = vmatprep.subr.mxu1 %v2970_v34 }
 0xf42   :  { %2815 = vmatpush3.xpose.msk.msra.mxu0 %vm179_vm2, %v1723_v10  ;;  %2816 = vmatprep.mubr.msk.f32.mxu0 %vm2971_vm1, %v2970_v34 }
 0xf43   :  { %2822 = vmatmul.mubr.msk.f32.vlgmr.msra.gmra.mxu1 %vm179_vm2, %v1799_v17  ;;  %2824 = vmatprep.subr.mxu0 %v2970_v34 }
 0xf44   :  { %2831 = vmatprep.mubr.msk.f32.mxu1 %vm2971_vm1, %v2970_v34 }
 0xf45   :  { %2817 = vmatmul.mubr.msk.f32.vlgmr.msra.gmra.mxu0 %vm179_vm2, %v1721_v18 }
 0xf46   :  { %2826 = vmatprep.mubr.msk.f32.mxu0 %vm2971_vm1, %v2970_v34 }
 0xfff   :  { %v1716_v20 = vpop.f32.mrf.mxu1 }
0x1001   :  { %v1640_v21 = vpop.f32.mrf.mxu0  ;;  %v2813_v22 = vpop.f32.mrf.mxu1 }
0x1002   :  { %v2581_v22 = vld [vmem:[%s3451_s6 + $0x38] sm:$0xff] }
0x1003   :  { %v2808_v23 = vpop.f32.mrf.mxu0  ;;  %v1872_v24 = vpop.f32.mrf.mxu1 }
0x1004   :  { %v1879_v25 = vsel %vm331_vm3, %v1872_v24, -inf  ;;  %v2580_v23 = vld [vmem:[%s3451_s6 + $0x30] sm:$0xff] }
0x1005   :  { %1880 = vmax.xlane.f32.xlu1 %v1879_v25  ;;  %v1794_v26 = vpop.f32.mrf.mxu0  ;;  %v2823_v27 = vpop.f32.mrf.mxu1  ;;  %v2578_v25 = vld [vmem:[%s3451_s6 + $0x20] sm:$0xff] }
0x1006   :  { %v1876_v28 = vsel %vm331_vm3, %v1794_v26, -inf }
0x1007   :  { %1877 = vmax.xlane.f32.xlu0 %v1876_v28  ;;  %v2818_v29 = vpop.f32.mrf.mxu0 }
0x1016   :  { %1974 = vrot.lane.b32.xlu1 %v3284_v50, %s2976_s29 }
0x108e   :  { %v1881_v30 = vpop.xlane.xlu1 %1880 }
0x108f   :  { %v1883_v36 = vsub.f32 %v1872_v24, %v1881_v30  ;;  %v2579_v24 = vld [vmem:[%s3451_s6 + $0x28] sm:$0xff] }
0x1090   :  { %v1878_v34 = vpop.xlane.xlu0 %1877 }
0x1091   :  { %v1886_v37 = vmul.f32 1.442695, %v1883_v36  ;;  %v1882_v38 = vsub.f32 %v1794_v26, %v1878_v34 }
0x1092   :  { %v1975_v39 = vpop.permute.xlu1 %1974 }
0x1093   :  { %2928 = vpow2.f32 %v1886_v37  ;;  %v1884_v40 = vmul.f32 1.442695, %v1882_v38  ;;  %2830 = vmatpush3.msra.mxu1 %v1975_v39  ;;  %v2249_v37 = vrot.slane %v3367_v0, %v1034_v16  ;;  %v2592_v16 = vld [vmem:[%s3453_s8 + $0x70] sm:$0xff] }
0x1094   :  { %2841 = vmatprep.subr.mxu1 %v2558_v48 }
0x1095   :  { %2930 = vpow2.f32 %v1884_v40 }
0x10a0   :  { %v2929_v41 = vpop.eup %2928 }
0x10a1   :  { %v1891_v42 = vsel %vm331_vm3, %v2929_v41, 0.0 }
0x10a2   :  { %v2931_v43 = vpop.eup %2930  ;;  %1892 = vadd.xlane.f32.xlu0 %v1891_v42  ;;  %v2255_v42 = vrot.slane %v3367_v0, %v1040_v19  ;;  %v2591_v19 = vld [vmem:[%s3453_s8 + $0x68] sm:$0xff] }
0x10a3   :  { %v1888_v49 = vsel %vm331_vm3, %v2931_v43, 0.0 }
0x10a6   :  { %1889 = vadd.xlane.f32.xlu0 %v1888_v49 }
0x10bc   :  { %1898 = vrot.lane.b32.xlu0 %v3286_v52, %s2976_s29 }
0x112b   :  { %v1893_v50 = vpop.xlane.xlu0 %1892 }
0x112c   :  { %2932 = vrcp.f32 %v1893_v50  ;;  %v2593_v50 = vld [vmem:[%s3453_s8 + $0x78] sm:$0xff] }
0x112f   :  { %v1890_v51 = vpop.xlane.xlu0 %1889 }
0x1130   :  { %2934 = vrcp.f32 %v1890_v51  ;;  %v2590_v51 = vld [vmem:[%s3453_s8 + $0x60] sm:$0xff] }
0x1133   :  { %v1899_v53 = vpop.permute.xlu0 %1898 }
0x1134   :  { %2825 = vmatpush3.msra.mxu0 %v1899_v53  ;;  %v2589_v53 = vld [vmem:[%s3453_s8 + $0x58] sm:$0xff] }
0x1135   :  { %2834 = vmatprep.subr.mxu0 %v2560_v58 }
0x1139   :  { %v2933_v54 = vpop.eup %2932 }
0x113a   :  { %v1897_v55 = vmul.f32 %v2933_v54, %v2929_v41  ;;  %v2588_v54 = vld [vmem:[%s3453_s8 + $0x50] sm:$0xff] }
0x113c   :  { %2832 = vmatmul.mubr.msk.f32.vlgmr.msra.gmra.mxu1 %vm331_vm3, %v1897_v55  ;;  %v2587_v55 = vld [vmem:[%s3453_s8 + $0x48] sm:$0xff] }
0x113d   :  { %v2935_v52 = vpop.eup %2934  ;;  %2842 = vmatpush3.msra.mxu1 %v2558_v48  ;;  %2845 = vmatprep.mubr.msk.f32.mxu1 %vm179_vm2, %v1640_v21 }
0x113e   :  { %2843 = vmatprep.subr.mxu1 %v2557_v56  ;;  %v1896_v57 = vmul.f32 %v2935_v52, %v2931_v43  ;;  %v2583_v52 = vld [vmem:[%s3452_s7 + $0x1] ss:$0 sm:$0xff]  ;;  %s2977_s7 = smov [#allocation2]  }
0x113f   :  { %2844 = vmatpush3.msra.mxu1 %v2557_v56  ;;  %v2586_v56 = vld [vmem:[%s3453_s8 + $0x40] sm:$0xff]  ;;  %s2512_s8 = sshll.u32 %s2977_s7, 4  ;;  %s2513_s8 = int_to_ptr.vmem [resolvable:$true] %s2512_s8 }
0x1140   :  { %2827 = vmatmul.mubr.msk.f32.vlgmr.msra.gmra.mxu0 %vm331_vm3, %v1896_v57  ;;  %2846 = vmatmul.mubr.msk.f32.vlgmr.msra.gmra.mxu1 %vm179_vm2, %v1716_v20  ;;  %s2948_s19 = scalar_lea.vmem %s2513_s8, 768  ;;  %p2953_p1 = scmp.lt.s32.totalorder %s2513_s8, %s2513_s8 }
0x1141   :  { %2835 = vmatpush3.msra.mxu0 %v2560_v58  ;;  %2859 = vmatprep.subr.mxu1 %v2593_v50  ;;  %p2949_p0 = scmp.ne.s32.totalorder %s2513_s8, %s2948_s19  ;;  %p2954_p2 = scmp.lt.s32.totalorder %s2948_s19, %s2948_s19 }
0x1142   :  { %2836 = vmatprep.subr.mxu0 %v2559_v59  ;;  %2860 = vmatpush3.msra.mxu1 %v2593_v50 }
0x1143   :  { %2837 = vmatpush3.msra.mxu0 %v2559_v59  ;;  %2861 = vmatprep.subr.mxu1 %v2592_v16  ;;  %p2955_p3 = por %p2954_p2, %p2953_p1 }
0x1144   :  { %2848 = vmatprep.subr.mxu0 %v2581_v22  ;;  %2862 = vmatpush3.msra.mxu1 %v2592_v16 }
0x1145   :  { %2863 = vmatprep.subr.mxu1 %v2591_v19  ;;  %p2956_p4 = pnand %p2955_p3, %p2949_p0 }
0x1146   :  { %2864 = vmatpush3.msra.mxu1 %v2591_v19 }
0x1147   :  { %2865 = vmatprep.subr.mxu1 %v2590_v51 }
0x1148   :  { %2866 = vmatpush3.msra.mxu1 %v2590_v51 }
0x1149   :  { %2867 = vmatprep.subr.mxu1 %v2589_v53 }
0x114a   :  { %2868 = vmatpush3.msra.mxu1 %v2589_v53 }
0x114b   :  { %2869 = vmatprep.subr.mxu1 %v2588_v54 }
0x114c   :  { %2870 = vmatpush3.msra.mxu1 %v2588_v54 }
0x114d   :  { %2871 = vmatprep.subr.mxu1 %v2587_v55 }
0x114e   :  { %2872 = vmatpush3.msra.mxu1 %v2587_v55 }
0x114f   :  { %2873 = vmatprep.subr.mxu1 %v2586_v56 }
0x1150   :  { %2874 = vmatpush3.msra.mxu1 %v2586_v56 }
0x11fc   :  { %v2046_v60 = vpop.f32.mrf.mxu1 }
0x11fe   :  { %v2833_v61 = vpop.f32.mrf.mxu1 }
0x1200   :  { %v1970_v62 = vpop.f32.mrf.mxu0  ;;  %v2847_v2 = vpop.f32.mrf.mxu1 }
0x1201   :  { %2838 = vmatprep.mubr.msk.f32.mxu0 %vm179_vm2, %v1970_v62 }
0x1202   :  { %v2828_v63 = vpop.f32.mrf.mxu0  ;;  %2839 = vmatmul.mubr.msk.f32.vlgmr.msra.gmra.mxu0 %vm179_vm2, %v2046_v60  ;;  %v2203_v5 = vpop.f32.mrf.mxu1 }
0x1203   :  { %2849 = vmatpush3.msra.mxu0 %v2581_v22 }
0x1204   :  { %2850 = vmatprep.subr.mxu0 %v2580_v23 }
0x1205   :  { %2851 = vmatpush3.msra.mxu0 %v2580_v23 }
0x1206   :  { %2852 = vmatprep.subr.mxu0 %v2579_v24 }
0x1207   :  { %2853 = vmatpush3.msra.mxu0 %v2579_v24 }
0x1208   :  { %2854 = vmatprep.subr.mxu0 %v2578_v25 }
0x1209   :  { %2855 = vmatpush3.msra.mxu0 %v2578_v25 }
0x12c2   :  { %v2840_v3 = vpop.f32.mrf.mxu0 }
0x12c3   :  { %v2209_v4 = vadd.f32 %v2847_v2, %v2840_v3 }
0x12c4   :  { %v2122_v31 = vpop.f32.mrf.mxu0 }
0x12c5   :  { %v2213_v6 = vadd.f32 %v2209_v4, %v3267_v44  ;;  %v2204_v7 = vadd.f32 %v2203_v5, %v2122_v31 }
0x12c7   :  { %v2212_v8 = vadd.f32 %v2204_v7, %v3269_v45  ;;  %v2219_v9 = vadd.f32 %v2217_v33, %v2213_v6 }
0x12c9   :  { %v2223_v10 = vsel %vm37_vm0, %v2219_v9, 0.0  ;;  %v2218_v11 = vadd.f32 %v2217_v33, %v2212_v8 }
0x12ca   :  { %2224 = vadd.xlane.f32.xlu0 %v2223_v10 }
0x12cb   :  { %v2220_v12 = vsel %vm37_vm0, %v2218_v11, 0.0 }
0x12cc   :  { %2221 = vadd.xlane.f32.xlu1 %v2220_v12 }
0x1353   :  { %v2225_v13 = vpop.xlane.xlu0 %2224 }
0x1354   :  { %v2227_v14 = vmul.f32 0.03125, %v2225_v13 }
0x1355   :  { %v2222_v15 = vpop.xlane.xlu1 %2221 }
0x1356   :  { %v2229_v17 = vsub.f32 %v2219_v9, %v2227_v14  ;;  %v2226_v47 = vmul.f32 0.03125, %v2222_v15  ;;  %v2382_v15 = vrot.slane %v3367_v0, %v1164_v1 }
0x1358   :  { %v2228_v18 = vsub.f32 %v2218_v11, %v2226_v47  ;;  %v2231_v20 = vmul.f32 %v2229_v17, %v2229_v17 }
0x135a   :  { %v2235_v44 = vsel %vm37_vm0, %v2231_v20, 0.0  ;;  %v2230_v21 = vmul.f32 %v2228_v18, %v2228_v18 }
0x135b   :  { %2236 = vadd.xlane.f32.xlu1 %v2235_v44 }
0x135c   :  { %v2232_v45 = vsel %vm37_vm0, %v2230_v21, 0.0 }
0x135d   :  { %2233 = vadd.xlane.f32.xlu0 %v2232_v45 }
0x13e4   :  { %v2237_v26 = vpop.xlane.xlu1 %2236 }
0x13e5   :  { %v2239_v27 = vmul.f32 0.03125, %v2237_v26 }
0x13e6   :  { %v2234_v28 = vpop.xlane.xlu0 %2233 }
0x13e7   :  { %v2241_v29 = vadd.f32 1e-12, %v2239_v27  ;;  %v2238_v30 = vmul.f32 0.03125, %v2234_v28 }
0x13e9   :  { %2936 = vrsqrt.f32 %v2241_v29  ;;  %v2240_v36 = vadd.f32 1e-12, %v2238_v30 }
0x13eb   :  { %2938 = vrsqrt.f32 %v2240_v36 }
0x13f6   :  { %v2937_v34 = vpop.eup %2936 }
0x13f7   :  { %v2245_v38 = vmul.f32 %v2937_v34, %v2229_v17 }
0x13f8   :  { %v2939_v39 = vpop.eup %2938 }
0x13f9   :  { %v2244_v40 = vmul.f32 %v2939_v39, %v2228_v18  ;;  %v2251_v41 = vmul.f32 %v2249_v37, %v2245_v38 }
0x13fb   :  { %v2250_v43 = vmul.f32 %v2249_v37, %v2244_v40  ;;  %v2257_v48 = vadd.f32 %v2255_v42, %v2251_v41 }
0x13fd   :  { %v2256_v49 = vadd.f32 %v2255_v42, %v2250_v43  ;;  %v2495_v42 = vrot.slane %v3367_v0, %v1278_v32 }
0x13ff   :  { %2856 = vmatprep.mubr.msk.f32.mxu0 %vm37_vm0, %v2256_v49 }
0x1400   :  { %2857 = vmatmul.mubr.msk.f32.vlgmr.msra.gmra.mxu0 %vm37_vm0, %v2257_v48 }
0x14c0   :  { %v2858_v57 = vpop.f32.mrf.mxu0 }
0x14c1   :  { %v2349_v58 = vadd.f32 %v2858_v57, %v2583_v52 }
0x14c2   :  { %v2343_v59 = vpop.f32.mrf.mxu0 }
0x14c3   :  { %v2353_v60 = vmul.f32 %v2349_v58, %v2349_v58  ;;  %v2344_v61 = vadd.f32 %v2583_v52, %v2343_v59 }
0x14c5   :  { %v2355_v62 = vmul.f32 %v2353_v60, %v2349_v58  ;;  %v2352_v63 = vmul.f32 %v2344_v61, %v2344_v61 }
0x14c7   :  { %v2357_v2 = vmul.f32 0.044715, %v2355_v62  ;;  %v2354_v3 = vmul.f32 %v2352_v63, %v2344_v61 }
0x14c9   :  { %v2359_v4 = vadd.f32 %v2357_v2, %v2349_v58  ;;  %v2356_v33 = vmul.f32 0.044715, %v2354_v3 }
0x14cb   :  { %v2361_v5 = vmul.f32 0.7978846, %v2359_v4  ;;  %v2358_v31 = vadd.f32 %v2356_v33, %v2344_v61 }
0x14cd   :  { %2940 = vtanh.f32 %v2361_v5  ;;  %v2360_v6 = vmul.f32 0.7978846, %v2358_v31 }
0x14cf   :  { %2942 = vtanh.f32 %v2360_v6 }
0x14da   :  { %v2941_v7 = vpop.eup %2940 }
0x14db   :  { %v2365_v8 = vadd.f32 1.0, %v2941_v7 }
0x14dc   :  { %v2943_v9 = vpop.eup %2942 }
0x14dd   :  { %v2364_v10 = vadd.f32 1.0, %v2943_v9  ;;  %v2367_v11 = vmul.f32 0.5, %v2365_v8 }
0x14df   :  { %v2366_v12 = vmul.f32 0.5, %v2364_v10  ;;  %v2369_v14 = vmul.f32 %v2367_v11, %v2349_v58 }
0x14e1   :  { %v2368_v13 = vmul.f32 %v2366_v12, %v2344_v61 }
0x14e3   :  { %2875 = vmatprep.mubr.msk.f32.mxu1 %vm1166_vm4, %v2368_v13 }
0x14e4   :  { %2876 = vmatmul.mubr.msk.f32.vlgmr.msra.gmra.mxu1 %vm1166_vm4, %v2369_v14 }
0x15a4   :  { %v2877_v17 = vpop.f32.mrf.mxu1 }
0x15a5   :  { %v2461_v47 = vadd.f32 %v2877_v17, %v2382_v15 }
0x15a6   :  { %v2455_v18 = vpop.f32.mrf.mxu1 }
0x15a7   :  { %v2456_v20 = vadd.f32 %v2455_v18, %v2382_v15  ;;  %v2465_v44 = vadd.f32 %v2461_v47, %v2257_v48 }
0x15a9   :  { %v2469_v21 = vsel %vm37_vm0, %v2465_v44, 0.0  ;;  %v2464_v45 = vadd.f32 %v2456_v20, %v2256_v49  ;;  %v2501_v49 = vrot.slane %v3367_v0, %v1284_v35 }
0x15aa   :  { %2470 = vadd.xlane.f32.xlu1 %v2469_v21 }
0x15ab   :  { %v2466_v22 = vsel %vm37_vm0, %v2464_v45, 0.0 }
0x15ac   :  { %2467 = vadd.xlane.f32.xlu0 %v2466_v22 }
0x1633   :  { %v2471_v23 = vpop.xlane.xlu1 %2470 }
0x1634   :  { %v2473_v24 = vmul.f32 0.03125, %v2471_v23 }
0x1635   :  { %v2468_v25 = vpop.xlane.xlu0 %2467 }
0x1636   :  { %v2475_v26 = vsub.f32 %v2465_v44, %v2473_v24  ;;  %v2472_v27 = vmul.f32 0.03125, %v2468_v25 }
0x1638   :  { %v2474_v28 = vsub.f32 %v2464_v45, %v2472_v27  ;;  %v2477_v29 = vmul.f32 %v2475_v26, %v2475_v26 }
0x163a   :  { %v2481_v1 = vsel %vm37_vm0, %v2477_v29, 0.0  ;;  %v2476_v30 = vmul.f32 %v2474_v28, %v2474_v28 }
0x163b   :  { %2482 = vadd.xlane.f32.xlu1 %v2481_v1 }
0x163c   :  { %v2478_v36 = vsel %vm37_vm0, %v2476_v30, 0.0 }
0x163d   :  { %2479 = vadd.xlane.f32.xlu0 %v2478_v36 }
0x16c4   :  { %v2483_v34 = vpop.xlane.xlu1 %2482 }
0x16c5   :  { %v2485_v37 = vmul.f32 0.03125, %v2483_v34 }
0x16c6   :  { %v2480_v38 = vpop.xlane.xlu0 %2479 }
0x16c7   :  { %v2487_v39 = vadd.f32 1e-12, %v2485_v37  ;;  %v2484_v40 = vmul.f32 0.03125, %v2480_v38 }
0x16c9   :  { %2944 = vrsqrt.f32 %v2487_v39  ;;  %v2486_v41 = vadd.f32 1e-12, %v2484_v40 }
0x16cb   :  { %2946 = vrsqrt.f32 %v2486_v41 }
0x16d6   :  { %v2945_v43 = vpop.eup %2944 }
0x16d7   :  { %v2491_v48 = vmul.f32 %v2945_v43, %v2475_v26 }
0x16d8   :  { %v2947_v50 = vpop.eup %2946 }
0x16d9   :  { %v2497_v16 = vmul.f32 %v2495_v42, %v2491_v48  ;;  %v2490_v19 = vmul.f32 %v2947_v50, %v2474_v28 }
0x16db   :  { %v2503_v51 = vadd.f32 %v2501_v49, %v2497_v16  ;;  %v2496_v53 = vmul.f32 %v2495_v42, %v2490_v19 }
0x16dd   :  { %2506 = vst.msk [vmem:[#allocation2 + $0x28] sm:$0xff] %vm37_vm0, %v2503_v51  ;;  %v2502_v54 = vadd.f32 %v2501_v49, %v2496_v53 }
0x16df   :  { %2505 = vst.msk [vmem:[#allocation2 + $0x10] sm:$0xff] %vm37_vm0, %v2502_v54 }
0x16e0   :  { %2959 = shalt.err (!%p2956_p4)
}
0x16e1   :  { %s2978_s20 = smov 128   ;;  %s2979_s4 = smov 8  }
0x16e2   :  { %2518 = dma.vmem_to_hbm [thread:$0]  %s2513_s8, 768, %s3454_s9, [#allocation3], %s2978_s20, %s2978_s20, %s2979_s4  }
0x16e3   :  { %2968 = dma.done.wait [#allocation3], 768  }
0x16e4   :  { %2969 = vsyncadd [#allocation3], 4294966528 }
0x16e5   :  { %2522 = vsyncpa [#allocation3], 1 }

</bundles_post_ra>
